<compile_context>
chip_gen: v6e
topology: v6e:2x2x1
jax: 0.10.0
libtpu: 0.0.40
codegen_flags: <defaults>
</compile_context>

<pallas_src>
import jax
import jax.numpy as jnp
from jax.experimental import pallas as pl
from jax.experimental.pallas import tpu as pltpu


_TM_DEFAULT = 1024   # row tile (rows of A / out)
_TK_DEFAULT = 2048   # reduction tile (cols of A / rows of x)


def gin_kernel(eps_ref, a_ref, xk_ref, xr_ref, wt_ref, b_ref, o_ref, acc_ref):
    """One (row-tile, k-tile) grid step.

    eps_ref: SMEM (1,) f32            -- learnable epsilon
    a_ref:   VMEM (TM, TK) bf16       -- adjacency tile
    xk_ref:  VMEM (TK, F_in) bf16     -- x rows matching the K slice (matmul RHS)
    xr_ref:  VMEM (TM, F_in) bf16     -- x rows matching the row tile (self term)
    wt_ref:  VMEM (F_in, F_out) bf16  -- Linear weight, pre-transposed (resident)
    b_ref:   VMEM (1, F_out) f32      -- Linear bias (resident)
    o_ref:   VMEM (TM, F_out) f32     -- output tile
    acc_ref: VMEM (TM, F_in) f32      -- A @ x accumulator (scratch)
    """
    k = pl.program_id(1)

    # Pure MXU inner step: bf16 inputs, f32 accumulation.
    contrib = jnp.dot(a_ref[...], xk_ref[...], preferred_element_type=jnp.float32)

    @pl.when(k == 0)
    def _first():
        acc_ref[...] = contrib          # direct store: no separate zero-init pass

    @pl.when(k != 0)
    def _accumulate():
        acc_ref[...] += contrib

    @pl.when(k == pl.num_programs(1) - 1)
    def _finalize():
        eps = eps_ref[0]
        # f32 epilogue: self term applied once per row tile, not per K step.
        agg = acc_ref[...] + (1.0 + eps) * xr_ref[...].astype(jnp.float32)
        out = jnp.dot(agg.astype(wt_ref.dtype), wt_ref[...],
                      preferred_element_type=jnp.float32) + b_ref[...]
        o_ref[...] = out.astype(o_ref.dtype)


def _round_up(n, m):
    return (n + m - 1) // m * m


def _tile_plan(n_nodes, tm, tk):
    """Adaptive tile sizes + independent row/K paddings (bounded padding waste)."""
    assert tm % 16 == 0, f"tm must be a multiple of 16 (bf16 sublane packing): {tm}"
    assert tk % 128 == 0, f"tk must be a multiple of 128 (lane width): {tk}"
    tm_eff = min(tm, _round_up(n_nodes, 128))
    tk_eff = min(tk, _round_up(n_nodes, 256))
    n_rows = _round_up(n_nodes, tm_eff)
    # Keep >= 2 row tiles when possible so the "parallel" axis can shard across
    # TensorCores (v7x megacore).
    if n_rows // tm_eff < 2 and tm_eff % 256 == 0:
        tm_eff //= 2
        n_rows = _round_up(n_nodes, tm_eff)
    n_k = _round_up(n_nodes, tk_eff)
    return tm_eff, tk_eff, n_rows, n_k


def prepare_adjacency(A, *, tm=_TM_DEFAULT, tk=_TK_DEFAULT):
    """Pad + cast A to bf16 once (hoist out of gin_forward; reuse across layers).

    A must be 0/1-valued (or otherwise bf16-exact): the kernel feeds it to the
    MXU in bf16.
    """
    n_nodes = A.shape[0]
    assert A.shape == (n_nodes, n_nodes), A.shape
    _, _, n_rows, n_k = _tile_plan(n_nodes, tm, tk)
    return jnp.zeros((n_rows, n_k), jnp.bfloat16).at[:n_nodes, :n_nodes].set(
        A.astype(jnp.bfloat16))


def gin_forward(A, x, W, b, eps, *, tm=_TM_DEFAULT, tk=_TK_DEFAULT,
                vmem_limit_bytes=None):
    """GIN forward: ((1 + eps) * x + A @ x) @ W^T + b.

    A:   [N, N] raw adjacency (0/1-valued; exact in bf16), or the padded bf16
         array returned by prepare_adjacency(A, tm=tm, tk=tk).
    x:   [N, F_in], W: [F_out, F_in], b: [F_out], eps: scalar.
    Returns f32 [N, F_out] (matches the PyTorch reference for f32 inputs).
    """
    N, f_in = x.shape
    f_out, f_in_w = W.shape
    assert f_in_w == f_in, (W.shape, x.shape)

    tm_eff, tk_eff, n_rows, n_k = _tile_plan(N, tm, tk)
    f_in_p = _round_up(f_in, 128)
    f_out_p = _round_up(f_out, 128)

    f32, bf16 = jnp.float32, jnp.bfloat16
    if A.shape == (n_rows, n_k) and A.dtype == bf16:
        a_p = A                          # pre-prepared: no per-call pad/cast
    elif A.shape == (N, N):
        a_p = jnp.zeros((n_rows, n_k), bf16).at[:N, :N].set(A.astype(bf16))
    else:
        raise ValueError(
            f"A has shape {A.shape} / dtype {A.dtype}; expected raw ({N},{N}) or "
            f"prepared bf16 ({n_rows},{n_k}) for tm={tm}, tk={tk}")

    # One bf16 copy of x feeds both the K-slice stream and the row-slice self term.
    n_x = max(n_rows, n_k)
    x_bf = jnp.zeros((n_x, f_in_p), bf16).at[:N, :f_in].set(x.astype(bf16))
    # Pre-transposed weight keeps the epilogue on the natural (M,K)x(K,N) MXU path.
    wt_p = jnp.zeros((f_in_p, f_out_p), bf16).at[:f_in, :f_out].set(W.T.astype(bf16))
    b_p = jnp.zeros((1, f_out_p), f32).at[0, :f_out].set(b.astype(f32))
    eps1 = jnp.asarray(eps, f32).reshape(1)

    if vmem_limit_bytes is None:
        # Double-buffered streams + residents + scratch, with headroom.  Set
        # explicitly so large tiles also clear v5e's 16 MiB scoped default while
        # staying within v7x's 64 MiB per-TC VMEM.
        need = (2 * (tm_eff * tk_eff * 2            # A tile (double-buffered)
                     + tk_eff * f_in_p * 2          # x K-slice
                     + tm_eff * f_in_p * 2          # x row-slice
                     + tm_eff * f_out_p * 4)        # output tile (f32)
                + tm_eff * f_in_p * 4               # accumulator scratch
                + 2 * (f_in_p * f_out_p * 2 + f_out_p * 4))  # W^T + bias
        vmem_limit_bytes = int(min(max(need + (4 << 20), 16 << 20), 64 << 20))

    cost = pl.CostEstimate(
        flops=2 * n_rows * n_k * f_in_p + 2 * n_rows * f_in_p * f_out_p,
        transcendentals=0,
        bytes_accessed=(a_p.size * 2
                        + (n_rows // tm_eff) * n_k * f_in_p * 2   # xk per row tile
                        + n_rows * f_in_p * 2                      # xr
                        + wt_p.size * 2 + b_p.size * 4
                        + n_rows * f_out_p * 4),
    )

    out_p = pl.pallas_call(
        gin_kernel,
        out_shape=jax.ShapeDtypeStruct((n_rows, f_out_p), jnp.float32),
        grid_spec=pltpu.PrefetchScalarGridSpec(
            num_scalar_prefetch=0,
            grid=(n_rows // tm_eff, n_k // tk_eff),
            in_specs=[
                pl.BlockSpec(memory_space=pltpu.SMEM),                  # eps
                pl.BlockSpec((tm_eff, tk_eff), lambda i, k: (i, k)),    # A tile
                pl.BlockSpec((tk_eff, f_in_p), lambda i, k: (k, 0)),    # x (K slice)
                pl.BlockSpec((tm_eff, f_in_p), lambda i, k: (i, 0)),    # x (row slice)
                pl.BlockSpec((f_in_p, f_out_p), lambda i, k: (0, 0)),   # W^T (resident)
                pl.BlockSpec((1, f_out_p), lambda i, k: (0, 0)),        # bias (resident)
            ],
            out_specs=pl.BlockSpec((tm_eff, f_out_p), lambda i, k: (i, 0)),
            scratch_shapes=[pltpu.VMEM((tm_eff, f_in_p), jnp.float32)],
        ),
        compiler_params=pltpu.CompilerParams(
            dimension_semantics=("parallel", "arbitrary"),
            vmem_limit_bytes=vmem_limit_bytes,
        ),
        cost_estimate=cost,
    )(eps1, a_p, x_bf, x_bf, wt_p, b_p)

    return out_p[:N, :f_out]


if __name__ == "__main__":
    # Small deterministic example: 512 nodes, 48 -> 80 features (non-multiples
    # of 128 to exercise the lane-padding path).
    N, F_IN, F_OUT = 512, 48, 80
    key = jax.random.PRNGKey(0)
    k_a, k_x, k_w, k_b = jax.random.split(key, 4)

    # Dense 0/1 adjacency (exact in bf16).
    A = (jax.random.uniform(k_a, (N, N)) > 0.7).astype(jnp.float32)
    x = jax.random.normal(k_x, (N, F_IN), dtype=jnp.float32)

    # nn.Linear(in_features, out_features): W [F_OUT, F_IN], b [F_OUT]
    bound = 1.0 / (F_IN ** 0.5)
    W = jax.random.uniform(k_w, (F_OUT, F_IN), minval=-bound, maxval=bound,
                           dtype=jnp.float32)
    b = jax.random.uniform(k_b, (F_OUT,), minval=-bound, maxval=bound,
                           dtype=jnp.float32)
    eps = jnp.float32(0.0)  # epsilon parameter initialized to zero, as in __init__

    # Reference in plain f32 JAX (kernel uses bf16 MXU inputs -> bf16 tolerance).
    ref = ((1.0 + eps) * x + A @ x) @ W.T + b

    # 1) Default (large, adaptive) tiles, with A's pad/cast hoisted out of the
    #    call via prepare_adjacency (reused across layers in a real GNN).
    a_prep = prepare_adjacency(A)
    out = jax.block_until_ready(gin_forward(a_prep, x, W, b, eps))
    assert out.shape == (N, F_OUT)
    rel_err = jnp.linalg.norm(out - ref) / jnp.linalg.norm(ref)
    assert rel_err < 2e-2, f"relative error too large: {rel_err}"

    # 2) Small explicit tiles: exercises the multi-K accumulation path
    #    (correctness check only; not a benchmarking configuration).
    out2 = jax.block_until_ready(gin_forward(A, x, W, b, eps, tm=128, tk=256))
    rel_err2 = jnp.linalg.norm(out2 - ref) / jnp.linalg.norm(ref)
    assert rel_err2 < 2e-2, f"relative error too large (multi-K): {rel_err2}"

    print("KERNEL_OK")
</pallas_src>

<mosaic_0001>
module attributes {stable_mosaic.version = 11 : i64} {
  func.func @gin_kernel(%arg0: i32, %arg1: i32, %arg2: memref<1xf32, #tpu.memory_space<smem>>, %arg3: memref<256x512xbf16, #tpu.memory_space<vmem>>, %arg4: memref<512x128xbf16, #tpu.memory_space<vmem>>, %arg5: memref<256x128xbf16, #tpu.memory_space<vmem>>, %arg6: memref<128x128xbf16, #tpu.memory_space<vmem>>, %arg7: memref<1x128xf32, #tpu.memory_space<vmem>>, %arg8: memref<256x128xf32, #tpu.memory_space<vmem>>, %arg9: memref<256x128xf32, #tpu.memory_space<vmem>>) attributes {dimension_semantics = [#tpu.dimension_semantics<parallel>, #tpu.dimension_semantics<arbitrary>], iteration_bounds = array<i64: 2, 1>, scalar_prefetch = 0 : i64, scratch_operands = 1 : i64, tpu.core_type = #tpu.core_type<tc>, window_params = [{transform_indices = @transform_0, window_bounds = array<i64: 1>}, {transform_indices = @transform_1, window_bounds = array<i64: 256, 512>}, {transform_indices = @transform_2, window_bounds = array<i64: 512, 128>}, {transform_indices = @transform_3, window_bounds = array<i64: 256, 128>}, {pipeline_mode = #tpu.pipeline_mode<synchronous>, transform_indices = @transform_4, window_bounds = array<i64: 128, 128>}, {pipeline_mode = #tpu.pipeline_mode<synchronous>, transform_indices = @transform_5, window_bounds = array<i64: 1, 128>}, {transform_indices = @transform_6, window_bounds = array<i64: 256, 128>}]} {
    %c0 = arith.constant 0 : index
    %c0_0 = arith.constant 0 : index
    %0 = vector.load %arg3[%c0, %c0_0] : memref<256x512xbf16, #tpu.memory_space<vmem>>, vector<256x512xbf16>
    %c0_1 = arith.constant 0 : index
    %c0_2 = arith.constant 0 : index
    %1 = vector.load %arg4[%c0_1, %c0_2] : memref<512x128xbf16, #tpu.memory_space<vmem>>, vector<512x128xbf16>
    %cst = arith.constant dense<0.000000e+00> : vector<256x128xf32>
    %2 = tpu.matmul %0, %1, %cst {dimension_numbers = #tpu.dot_dimension_numbers<[1], [0], [0], [1], [0, 0, 1, 1], [], []>} : vector<256x512xbf16>, vector<512x128xbf16>, vector<256x128xf32> -> vector<256x128xf32>
    %c0_i32 = arith.constant 0 : i32
    %3 = arith.cmpi eq, %arg1, %c0_i32 : i32
    %4 = arith.extui %3 : i1 to i32
    %c0_i32_3 = arith.constant 0 : i32
    %5 = arith.cmpi ne, %4, %c0_i32_3 : i32
    scf.if %5 {
      %c0_8 = arith.constant 0 : index
      %c0_9 = arith.constant 0 : index
      %12 = vector.load %arg9[%c0_8, %c0_9] : memref<256x128xf32, #tpu.memory_space<vmem>>, vector<256x128xf32>
      tpu.vector_store %arg9[%c0_8, %c0_9], %2 {strides = array<i32>} : memref<256x128xf32, #tpu.memory_space<vmem>>, vector<256x128xf32>,
    } else {
    }
    %c0_i32_4 = arith.constant 0 : i32
    %6 = arith.cmpi ne, %arg1, %c0_i32_4 : i32
    %7 = arith.extui %6 : i1 to i32
    %c0_i32_5 = arith.constant 0 : i32
    %8 = arith.cmpi ne, %7, %c0_i32_5 : i32
    scf.if %8 {
      %c0_8 = arith.constant 0 : index
      %c0_9 = arith.constant 0 : index
      %12 = vector.load %arg9[%c0_8, %c0_9] : memref<256x128xf32, #tpu.memory_space<vmem>>, vector<256x128xf32>
      %13 = arith.addf %12, %2 : vector<256x128xf32>
      %c0_10 = arith.constant 0 : index
      %c0_11 = arith.constant 0 : index
      %14 = vector.load %arg9[%c0_10, %c0_11] : memref<256x128xf32, #tpu.memory_space<vmem>>, vector<256x128xf32>
      tpu.vector_store %arg9[%c0_10, %c0_11], %13 {strides = array<i32>} : memref<256x128xf32, #tpu.memory_space<vmem>>, vector<256x128xf32>,
    } else {
    }
    %c0_i32_6 = arith.constant 0 : i32
    %9 = arith.cmpi eq, %arg1, %c0_i32_6 : i32
    %10 = arith.extui %9 : i1 to i32
    %c0_i32_7 = arith.constant 0 : i32
    %11 = arith.cmpi ne, %10, %c0_i32_7 : i32
    scf.if %11 {
      %c0_8 = arith.constant 0 : index
      %12 = memref.load %arg2[%c0_8] : memref<1xf32, #tpu.memory_space<smem>>
      %c0_9 = arith.constant 0 : index
      %c0_10 = arith.constant 0 : index
      %13 = vector.load %arg9[%c0_9, %c0_10] : memref<256x128xf32, #tpu.memory_space<vmem>>, vector<256x128xf32>
      %cst_11 = arith.constant 1.000000e+00 : f32
      %14 = arith.addf %cst_11, %12 : f32
      %c0_12 = arith.constant 0 : index
      %c0_13 = arith.constant 0 : index
      %15 = vector.load %arg5[%c0_12, %c0_13] : memref<256x128xbf16, #tpu.memory_space<vmem>>, vector<256x128xbf16>
      %16 = arith.extf %15 : vector<256x128xbf16> to vector<256x128xf32>
      %17 = vector.broadcast %14 : f32 to vector<256x128xf32>
      %18 = arith.mulf %17, %16 : vector<256x128xf32>
      %19 = arith.addf %13, %18 : vector<256x128xf32>
      %20 = arith.truncf %19 : vector<256x128xf32> to vector<256x128xbf16>
      %c0_14 = arith.constant 0 : index
      %c0_15 = arith.constant 0 : index
      %21 = vector.load %arg6[%c0_14, %c0_15] : memref<128x128xbf16, #tpu.memory_space<vmem>>, vector<128x128xbf16>
      %cst_16 = arith.constant dense<0.000000e+00> : vector<256x128xf32>
      %22 = tpu.matmul %20, %21, %cst_16 {dimension_numbers = #tpu.dot_dimension_numbers<[1], [0], [0], [1], [0, 0, 1, 1], [], []>} : vector<256x128xbf16>, vector<128x128xbf16>, vector<256x128xf32> -> vector<256x128xf32>
      %c0_17 = arith.constant 0 : index
      %c0_18 = arith.constant 0 : index
      %23 = vector.load %arg7[%c0_17, %c0_18] : memref<1x128xf32, #tpu.memory_space<vmem>>, vector<1x128xf32>
      %24 = vector.broadcast %23 : vector<1x128xf32> to vector<256x128xf32>
      %25 = arith.addf %22, %24 : vector<256x128xf32>
      %c0_19 = arith.constant 0 : index
      %c0_20 = arith.constant 0 : index
      %26 = vector.load %arg8[%c0_19, %c0_20] : memref<256x128xf32, #tpu.memory_space<vmem>>, vector<256x128xf32>
      tpu.vector_store %arg8[%c0_19, %c0_20], %25 {strides = array<i32>} : memref<256x128xf32, #tpu.memory_space<vmem>>, vector<256x128xf32>,
    } else {
    }
    return
  }
  func.func @transform_0(%arg0: i32, %arg1: i32) -> i32 {
    %c0_i32 = arith.constant 0 : i32
    %c0_i32_0 = arith.constant 0 : i32
    return %c0_i32 : i32
  }
  func.func @transform_1(%arg0: i32, %arg1: i32) -> (i32, i32) {
    %c0_i32 = arith.constant 0 : i32
    return %arg0, %arg1 : i32, i32
  }
  func.func @transform_2(%arg0: i32, %arg1: i32) -> (i32, i32) {
    %c0_i32 = arith.constant 0 : i32
    %c0_i32_0 = arith.constant 0 : i32
    return %arg1, %c0_i32 : i32, i32
  }
  func.func @transform_3(%arg0: i32, %arg1: i32) -> (i32, i32) {
    %c0_i32 = arith.constant 0 : i32
    %c0_i32_0 = arith.constant 0 : i32
    return %arg0, %c0_i32 : i32, i32
  }
  func.func @transform_4(%arg0: i32, %arg1: i32) -> (i32, i32) {
    %c0_i32 = arith.constant 0 : i32
    %c0_i32_0 = arith.constant 0 : i32
    %c0_i32_1 = arith.constant 0 : i32
    return %c0_i32, %c0_i32_0 : i32, i32
  }
  func.func @transform_5(%arg0: i32, %arg1: i32) -> (i32, i32) {
    %c0_i32 = arith.constant 0 : i32
    %c0_i32_0 = arith.constant 0 : i32
    %c0_i32_1 = arith.constant 0 : i32
    return %c0_i32, %c0_i32_0 : i32, i32
  }
  func.func @transform_6(%arg0: i32, %arg1: i32) -> (i32, i32) {
    %c0_i32 = arith.constant 0 : i32
    %c0_i32_0 = arith.constant 0 : i32
    return %arg0, %c0_i32 : i32, i32
  }
}

</mosaic_0001>

<bundles_post_ra>
// kernel: tpu_custom_call.1
= control target key start
LH: loop header
LB: loop body
LE: loop exit
PB: predicated region body
PF: predicated region fallthrough
CT: control target
= control target key end

     0   :  { %s3579_s0 = inlined_call_operand.<no memory space> [shape: f32[1], index: 0, kind: input, shape index: {}]   ;;  %s3580_s1 = inlined_call_operand.hbm [shape: bf16[512,512], index: 1, kind: input, shape index: {}]   ;;  %s3581_s2 = inlined_call_operand.hbm [shape: bf16[512,128], index: 2, kind: input, shape index: {}]   ;;  %s3582_s3 = inlined_call_operand.hbm [shape: bf16[512,128], index: 3, kind: input, shape index: {}]   ;;  %s3583_s4 = inlined_call_operand.hbm [shape: bf16[128,128], index: 4, kind: input, shape index: {}]   ;;  %s3584_s5 = inlined_call_operand.vmem [shape: f32[1,128], index: 5, kind: input, shape index: {}]   ;;  %s3585_s6 = inlined_call_operand.hbm [shape: f32[512,128], index: 6, kind: output, shape index: {}]  }
   0x1   :  { %3595 = sst [smem:[#allocation19_spill]] %s3580_s1 }
   0x2   :  { %3596 = sst [smem:[#allocation20_spill]] %s3581_s2 }
   0x3   :  { %11 = sst [smem:[#allocation3]] %s3579_s0 }
   0x4   :  { %12 = vsyncpa [#allocation5], 0 }
   0x5   :  { %14 = vsyncpa [#allocation5 + $0x1], 0 }
   0x6   :  { %15 = vsyncpa [#allocation8], 0 }
   0x7   :  { %16 = vsyncpa [#allocation6], 0 }
   0x8   :  { %18 = vsyncpa [#allocation6 + $0x1], 0  ;;  %s3056_s23 = smov 0   ;;  %s3058_s24 = smov 0  }
   0x9   :  { %s3060_s25 = smov 0   ;;  %s3062_s26 = smov 0  }
   0xa   :  { %s3064_s27 = smov 0   ;;  %s3066_s28 = smov 0  }
   0xb LB: > { %s3087_s0 = sadd.s32 4294967295, %s3005_s28   ;;  %s2052_s29 = sadd.s32 4294967294, %s3005_s28   ;;  %s3005_s28 = sphi %s3066_s28, %s24_s28   ;;  %s3001_s27 = sphi %s3064_s27, %s3624_s27   ;;  %s2997_s26 = sphi %s3062_s26, %s3623_s26   ;;  %s2993_s25 = sphi %s3060_s25, %s3622_s25   ;;  %s2989_s24 = sphi %s3058_s24, %s3621_s24   ;;  %s2985_s23 = sphi %s3056_s23, %s3620_s23  }
   0xc   : > { %p79_p0 = scmp.ne.s32.totalorder %s2989_s24, %s2985_s23  ;;  %p3591_p1 = scmp.eq.s32.totalorder %s3087_s0, 0 }
   0xd   : > { %p203_p3 = scmp.eq.s32.totalorder %s2052_s29, 1  ;;  %p2053_p5 = scmp.ge.s32.totalorder %s3005_s28, 1 }
   0xe   : > { %p3096_p4 = por %p3591_p1, %p79_p0  ;;  %p210_p7 = scmp.lt.s32.totalorder %s3005_s28, 3 }
   0xf   : > { %p3101_p6 = por %p203_p3, %p79_p0  ;;  %s3007_s9 = smov [#allocation7]  }
  0x10   : > { %p3106_p8 = pnand %p2053_p5, %p210_p7  ;;  %s228_s10 = sshll.u32 %s3007_s9, 4  ;;  %s229_s10 = int_to_ptr.vmem [resolvable:$true] %s228_s10 }
  0x11   : > { %s3598_s7 = scalar_select %p3101_p6, 1, 0 }
  0x12   : > { %p2589_p9 = pneg %p3106_p8  ;;  %s36_s12 = sadd.s32 1, %s3001_s27 }
  0x13   : > { %3599 = sst [smem:[#allocation17_spill]] %s3598_s7  ;;  %s2816_s13 = scalar_lea.vmem %s229_s10, 4096 }
  0x14   : > { %p3115_p11 = pnand %p2589_p9, %p3591_p1  ;;  %p2817_p13 = scmp.ne.s32.totalorder %s229_s10, %s2816_s13 }
  0x15   : > { %p2824_p5 = scmp.lt.s32.totalorder %s229_s10, %s229_s10  ;;  %p2825_p7 = scmp.lt.s32.totalorder %s2816_s13, %s2816_s13 }
  0x16   : > { %p3592_p12 = pneg %p3115_p11 }
  0x17   : > { %p2826_p2 = por %p2825_p7, %p2824_p5 }
  0x18   : > { %p2819_p0 = pnand %p2817_p13, %p3592_p12 }
  0x1a   : > { %p2820_p3 = pneg %p2819_p0 }
  0x1c   : > { %p2827_p10 = pnand %p2826_p2, %p2820_p3 }
  0x1e   : > { %2830 = shalt.err (!%p2827_p10)
}
  0x1f   : > { %s3586_s14 = smov 64   ;;  %s3588_s15 = smov 4  }
  0x20   : > { %s3602_s2 = sld [smem:[#allocation20_spill]]  ;;  %p38_p2 = scmp.ge.s32.totalorder %s36_s12, 2 }
  0x21   : > { %s66_s18 = sadd.s32 1, %s2993_s25  ;;  %p73_p9 = scmp.ne.s32.totalorder %s2993_s25, %s2989_s24 }
  0x22   : > { %p74_p10 = scmp.eq.s32.totalorder %s3005_s28, 0  ;;  %s3626_s12 = smov (%p38_p2, %s36_s12), 0 }
  0x23   : > { %3603 = sst [smem:[#allocation18_spill]] %s3626_s12  ;;  %p3605_p0 = scmp.eq.s32.totalorder %s3087_s0, 1 }
  0x24   : > { %p3139_p13 = por %p74_p10, %p73_p9  ;;  %s61_s21 = ssub.s32 %s3001_s27, %s3626_s12 }
  0x25   : > { %p3145_p3 = por %p3605_p0, %p73_p9  ;;  %p2609_p5 = scmp.lt.s32.totalorder %s3005_s28, 2 }
  0x26   : > { %2592 = dma.hbm_to_vmem [thread:$0]  (!%p3115_p11), %s3602_s2, 4096, %s229_s10, [#allocation8], %s3586_s14, %s3586_s14, %s3588_s15  }
  0x27   : > { %p64_p7 = scmp.eq.s32.totalorder %s61_s21, 0  ;;  %s258_s22 = sand.u32 1, %s3005_s28  }
  0x28   : > { %s260_s29 = sand.u32 1, %s2993_s25   ;;  %s2181_s13 = sshll.u32 %s3001_s27, 13 }
  0x29   : > { %s3155_s9 = scalar_select %p64_p7, %s2993_s25, %s66_s18  }
  0x2a   : > { %s2057_s10 = sshll.u32 %s260_s29, 9  ;;  %s3607_s1 = sld [smem:[#allocation19_spill]] }
  0x2b   : > { %s262_s15 = scalar_lea.vmem [#allocation4], %s2057_s10  ;;  %p3165_p2 = pnand %p2609_p5, %p3139_p13 }
  0x2c   : > { %s272_s2 = sshll.u32 %s262_s15, 4  ;;  %s3169_s21 = scalar_lea.sflag [#allocation5], %s258_s22  ;;  %s273_s2 = int_to_ptr.vmem [resolvable:$true] %s272_s2 }
  0x2d   : > { %p3594_p9 = pneg %p3165_p2  ;;  %s2844_s18 = scalar_lea.vmem %s273_s2, 8192 }
  0x2e   : > { %p2845_p10 = scmp.ne.s32.totalorder %s273_s2, %s2844_s18  ;;  %s3010_s10 = smov [#allocation4]  }
  0x2f   : > { %s2849_s15 = sshll.u32 %s3010_s10, 4  ;;  %s2850_s15 = int_to_ptr.vmem [resolvable:$false] %s2849_s15 }
  0x30   : > { %s271_s14 = scalar_lea.hbm %s3607_s1, %s2181_s13  ;;  %p2847_p0 = pnand %p2845_p10, %p3594_p9 }
  0x31   : > { %s2851_s19 = scalar_lea.vmem %s2850_s15, 16384  ;;  %p2852_p13 = scmp.lt.s32.totalorder %s273_s2, %s2850_s15 }
  0x32   : > { %p2848_p7 = pneg %p2847_p0  ;;  %p2853_p5 = scmp.lt.s32.totalorder %s2851_s19, %s2844_s18 }
  0x34   : > { %p2854_p1 = por %p2853_p5, %p2852_p13 }
  0x36   : > { %p2855_p12 = pnand %p2854_p1, %p2848_p7 }
  0x38   : > { %2858 = shalt.err (!%p2855_p12)
}
  0x39   : > { %s3011_s13 = smov 256   ;;  %s3012_s22 = smov 16  }
  0x3a   : > { %2599 = dma.hbm_to_vmem [thread:$0]  (!%p3165_p2), %s271_s14, 8192, %s273_s2, %s3169_s21, %s3011_s13, %s3011_s13, %s3012_s22  }
  0x3b   : > { %s2061_s16 = sshll.u32 %s260_s29, 7  ;;  %s3013_s17 = smov [#allocation10]  }
  0x3c   : > { %s241_s1 = sshll.u32 %s3013_s17, 4  ;;  %s286_s10 = scalar_lea.vmem [#allocation9], %s2061_s16  ;;  %s242_s1 = int_to_ptr.vmem [resolvable:$true] %s241_s1 }
  0x3d   : > { %s293_s12 = sshll.u32 %s286_s10, 4  ;;  %s2870_s15 = scalar_lea.vmem %s242_s1, 1024  ;;  %s294_s12 = int_to_ptr.vmem [resolvable:$true] %s293_s12 }
  0x3e   : > { %p2871_p10 = scmp.ne.s32.totalorder %s242_s1, %s2870_s15  ;;  %p3609_p1 = pneg %p3115_p11 }
  0x3f   : > { %p2878_p7 = scmp.lt.s32.totalorder %s242_s1, %s242_s1  ;;  %p2879_p13 = scmp.lt.s32.totalorder %s2870_s15, %s2870_s15 }
  0x40   : > { %p2873_p12 = pnand %p2871_p10, %p3609_p1 }
  0x41   : > { %p2880_p5 = por %p2879_p13, %p2878_p7 }
  0x42   : > { %p2874_p0 = pneg %p2873_p12 }
  0x44   : > { %p2881_p9 = pnand %p2880_p5, %p2874_p0 }
  0x46   : > { %2884 = shalt.err (!%p2881_p9)
}
  0x47   : > { %s3610_s2 = smov 4   ;;  %s3611_s14 = smov 64  }
  0x48   : > { %2595 = dma.hbm_to_vmem [thread:$0]  (!%p3115_p11), %s3583_s4, 1024, %s242_s1, [#allocation8], %s3611_s14, %s3611_s14, %s3610_s2  }
  0x49   : > { %s2182_s19 = sshll.u32 %s3001_s27, 11  ;;  %s2898_s17 = scalar_lea.vmem %s294_s12, 2048 }
  0x4a   : > { %s292_s16 = scalar_lea.hbm %s3582_s3, %s2182_s19  ;;  %p2899_p10 = scmp.ne.s32.totalorder %s294_s12, %s2898_s17 }
  0x4b   : > { %p3612_p9 = pneg %p3165_p2  ;;  %s3014_s11 = smov [#allocation9]  }
  0x4c   : > { %s2903_s10 = sshll.u32 %s3014_s11, 4  ;;  %s2904_s10 = int_to_ptr.vmem [resolvable:$false] %s2903_s10 }
  0x4d   : > { %p2901_p1 = pnand %p2899_p10, %p3612_p9  ;;  %s2905_s15 = scalar_lea.vmem %s2904_s10, 4096 }
  0x4e   : > { %p2906_p0 = scmp.lt.s32.totalorder %s294_s12, %s2904_s10  ;;  %p2907_p7 = scmp.lt.s32.totalorder %s2905_s15, %s2898_s17 }
  0x4f   : > { %p2902_p12 = pneg %p2901_p1 }
  0x50   : > { %p2908_p13 = por %p2907_p7, %p2906_p0 }
  0x52   : > { %p2909_p11 = pnand %p2908_p13, %p2902_p12 }
  0x54   : > { %2912 = shalt.err (!%p2909_p11)
}
  0x55   : > { %2602 = dma.hbm_to_vmem [thread:$0]  (!%p3165_p2), %s292_s16, 2048, %s294_s12, %s3169_s21, %s3611_s14, %s3611_s14, %s3610_s2  }
  0x56   : > { %305 = sbr.rel (%p3106_p8) target bundleno = 708 (0x2c4), region = 44  ;;  %s307_s1 = sand.u32 (!%p3106_p8), 1, %s3087_s0  }
  0x57   : > { %s3209_s29 = sand.u32 (!%p3106_p8), 1, %s2989_s24   ;;  %s308_s19 = scalar_lea.sflag (!%p3106_p8), [#allocation5], %s307_s1 }
  0x58   : > { %s2065_s18 = sshll.u32 (!%p3106_p8), %s3209_s29, 9 }
  0x59   : > { %s3212_s13 = scalar_lea.vmem (!%p3106_p8), [#allocation4], %s2065_s18 }
  0x5b   : > { %2964 = dma.done.wait (%p3096_p4), %s308_s19, 8192  }
  0x5c   : > { %2966 = vsyncadd (%p3096_p4), %s308_s19, 4294959104  ;;  %p3613_p2 = scmp.eq.s32.totalorder %s3087_s0, 0 }
  0x5e   : > { %2968 = dma.done.wait (%p3613_p2), [#allocation8], 4096   ;;  %p3614_p8 = pmov %p3613_p2 }
  0x5f   : > { %s2067_s7 = sshll.u32 %s3209_s29, 7 }
  0x60   : > { %2970 = vsyncadd (%p3614_p8), [#allocation8], 4294963200  ;;  %s3223_s8 = scalar_lea.vmem [#allocation9], %s2067_s7 }
  0x61   : > { %2972 = dma.done.wait (%p3096_p4), %s308_s19, 2048  }
  0x62   : > { %2974 = vsyncadd (%p3096_p4), %s308_s19, 4294965248  ;;  %p3615_p5 = pmov %p3613_p2 }
  0x63   : > { %p3616_p10 = pmov %p3613_p2 }
  0x64   : > { %2976 = dma.done.wait (%p3615_p5), [#allocation8], 1024  }
  0x65   : > { %2978 = vsyncadd (%p3616_p10), [#allocation8], 4294966272  ;;  %v2669_v0 = vld [vmem:[#allocation7 + $0x78] sm:$0xff]   ;;  %v2671_v2 = vld [vmem:[#allocation7 + $0x70] sm:$0xff]   ;;  %s1469_s0 = sld [smem:[#allocation3]]  ;;  %s2069_s12 = sshll.u32 %s3209_s29, 8 }
  0x66   : > { %v2670_v1 = vld [vmem:[#allocation7 + $0x38] sm:$0xff]   ;;  %2559 = vmatprep.subr.bf16.mxu1 %v2669_v0  ;;  %2263 = vmatprep.subr.bf16.mxu0 %v2669_v0  ;;  %v2672_v3 = vld [vmem:[#allocation7 + $0x30] sm:$0xff]   ;;  %v2673_v4 = vld [vmem:[#allocation7 + $0x68] sm:$0xff]   ;;  %s3459_s14 = scalar_lea.vmem [#allocation11], %s2069_s12  ;;  %s2183_s22 = sshll.u32 %s2997_s26, 12 }
  0x67   : > { %2567 = vmatpush3.bf16.msra.mxu1 %v2670_v1  ;;  %2264 = vmatpush3.bf16.msra.mxu0 %v2670_v1  ;;  %v2674_v5 = vld [vmem:[#allocation7 + $0x28] sm:$0xff]   ;;  %v2675_v6 = vld [vmem:[#allocation7 + $0x60] sm:$0xff]   ;;  %v2677_v8 = vld [vmem:[#allocation7 + $0x58] sm:$0xff]   ;;  %s1926_s16 = sshll.u32 %s3459_s14, 4  ;;  %s3526_s10 = scalar_lea.hbm %s3585_s6, %s2183_s22  ;;  %s3528_s16 = int_to_ptr.vmem [resolvable:$true] %s1926_s16 }
  0x68   : > { %2560 = vmatprep.subr.bf16.mxu1 %v2671_v2  ;;  %2265 = vmatprep.subr.bf16.mxu0 %v2671_v2  ;;  %v2676_v7 = vld [vmem:[#allocation7 + $0x20] sm:$0xff]   ;;  %v2678_v9 = vld [vmem:[#allocation7 + $0x18] sm:$0xff]   ;;  %v2679_v10 = vld [vmem:[#allocation7 + $0x50] sm:$0xff]   ;;  %s1913_s26 = scalar_lea.sflag [#allocation6], %s3209_s29  ;;  %s2913_s15 = scalar_lea.vmem %s3528_s16, 4096 }
  0x69   : > { %v2687_v11 = vld [vmem:[%s3212_s13 + $0x184] ss:$16 sps:$4 sm:$0xff]   ;;  %v2681_v13 = vld [vmem:[#allocation7 + $0x48] sm:$0xff]   ;;  %v2688_v17 = vld [vmem:[#allocation7 + $0xf8] sm:$0xff]   ;;  %p2914_p4 = scmp.ne.s32.totalorder %s3528_s16, %s2913_s15  ;;  %s3015_s1 = smov [#allocation11]  }
  0x6a   : > { %v2680_v12 = vld [vmem:[#allocation7 + $0x10] sm:$0xff]   ;;  %1136 = vmatprep.mubr.bf16.mxu1 %v2687_v11  ;;  %v2682_v14 = vld [vmem:[#allocation7 + $0x8] sm:$0xff]   ;;  %v2683_v15 = vld [vmem:[#allocation7 + $0x40] sm:$0xff]   ;;  %s2917_s18 = sshll.u32 %s3015_s1, 4  ;;  %s2918_s18 = int_to_ptr.vmem [resolvable:$false] %s2917_s18 }
  0x6b   : > { %2568 = vmatpush3.bf16.msra.mxu1 %v2672_v3  ;;  %2266 = vmatpush3.bf16.msra.mxu0 %v2672_v3  ;;  %v2684_v16 = vld [vmem:[#allocation7] sm:$0xff]   ;;  %v2689_v19 = vld [vmem:[#allocation7 + $0xb8] sm:$0xff]   ;;  %v2690_v21 = vld [vmem:[#allocation7 + $0xf0] sm:$0xff]   ;;  %s1502_s30 = sadd.f32 1.0, %s1469_s0  ;;  %p2915_p9 = pnand %p2914_p4, %p3145_p3 }
  0x6c   : > { %2561 = vmatprep.subr.bf16.mxu1 %v2673_v4  ;;  %2267 = vmatprep.subr.bf16.mxu0 %v2673_v4  ;;  %v2685_v18 = vld [vmem:[%s3212_s13 + $0x180] ss:$16 sps:$4 sm:$0xff]   ;;  %v2692_v20 = vld [vmem:[%s3212_s13 + $0x1a4] ss:$16 sps:$4 sm:$0xff]   ;;  %v2695_v24 = vld [vmem:[#allocation7 + $0xe8] sm:$0xff]   ;;  %s2919_s19 = scalar_lea.vmem %s2918_s18, 8192  ;;  %p2920_p12 = scmp.lt.s32.totalorder %s3528_s16, %s2918_s18 }
  0x6d   : > { %v2691_v22 = vld [vmem:[#allocation7 + $0xb0] sm:$0xff]   ;;  %v2696_v25 = vld [vmem:[#allocation7 + $0xa8] sm:$0xff]   ;;  %v2697_v28 = vld [vmem:[#allocation7 + $0xe0] sm:$0xff]   ;;  %p2916_p1 = pneg %p2915_p9  ;;  %p2921_p0 = scmp.lt.s32.totalorder %s2919_s19, %s2913_s15 }
  0x6e   : > { %v2694_v23 = vld [vmem:[%s3212_s13 + $0x1a0] ss:$16 sps:$4 sm:$0xff]   ;;  %v2715_v27 = vld [vmem:[%s3212_s13 + $0x4] ss:$16 sps:$4 sm:$0xff]   ;;  %v2702_v33 = vld [vmem:[#allocation7 + $0xd8] sm:$0xff]  }
  0x6f   : > { %2569 = vmatpush3.bf16.msra.mxu1 %v2674_v5  ;;  %2268 = vmatpush3.bf16.msra.mxu0 %v2674_v5  ;;  %v2713_v26 = vld [vmem:[%s3212_s13] ss:$16 sps:$4 sm:$0xff]   ;;  %v2699_v29 = vld [vmem:[%s3212_s13 + $0x1c4] ss:$16 sps:$4 sm:$0xff]   ;;  %v2703_v36 = vld [vmem:[#allocation7 + $0x98] sm:$0xff]   ;;  %p2922_p7 = por %p2921_p0, %p2920_p12 }
  0x70   : > { %2562 = vmatprep.subr.bf16.mxu1 %v2675_v6  ;;  %2269 = vmatprep.subr.bf16.mxu0 %v2675_v6  ;;  %v2719_v30 = vld [vmem:[%s3212_s13 + $0x24] ss:$16 sps:$4 sm:$0xff]   ;;  %v2701_v32 = vld [vmem:[%s3212_s13 + $0x1c0] ss:$16 sps:$4 sm:$0xff]   ;;  %v2709_v41 = vld [vmem:[#allocation7 + $0xc8] sm:$0xff]  }
  0x71   : > { %1040 = vmatprep.mubr.bf16.mxu0 %v2715_v27  ;;  %v2698_v31 = vld [vmem:[#allocation7 + $0xa0] sm:$0xff]   ;;  %v2704_v38 = vld [vmem:[#allocation7 + $0xd0] sm:$0xff]   ;;  %v2710_v44 = vld [vmem:[#allocation7 + $0x88] sm:$0xff]   ;;  %p2923_p13 = pnand %p2922_p7, %p2916_p1 }
  0x72   : > { %v2723_v34 = vld [vmem:[%s3212_s13 + $0x20] ss:$16 sps:$4 sm:$0xff]   ;;  %v2725_v35 = vld [vmem:[%s3212_s13 + $0x44] ss:$16 sps:$4 sm:$0xff]   ;;  %v2718_v45 = vld [vmem:[%s3212_s13 + $0xc] ss:$16 sps:$4 sm:$0xff]  }
  0x73   : > { %2570 = vmatpush3.bf16.msra.mxu1 %v2676_v7  ;;  %2270 = vmatpush3.bf16.msra.mxu0 %v2676_v7  ;;  %v2706_v37 = vld [vmem:[%s3212_s13 + $0x1e4] ss:$16 sps:$4 sm:$0xff]   ;;  %v2708_v40 = vld [vmem:[%s3212_s13 + $0x1e0] ss:$16 sps:$4 sm:$0xff]   ;;  %v2716_v48 = vld [vmem:[%s3212_s13 + $0x8] ss:$16 sps:$4 sm:$0xff]  }
  0x74   : > { %2563 = vmatprep.subr.bf16.mxu1 %v2677_v8  ;;  %2271 = vmatprep.subr.bf16.mxu0 %v2677_v8  ;;  %v2705_v39 = vld [vmem:[#allocation7 + $0x90] sm:$0xff]   ;;  %v2711_v46 = vld [vmem:[#allocation7 + $0xc0] sm:$0xff]   ;;  %v2721_v51 = vld [vmem:[%s3212_s13 + $0x2c] ss:$16 sps:$4 sm:$0xff]  }
  0x75   : > { %v2729_v42 = vld [vmem:[%s3212_s13 + $0x40] ss:$16 sps:$4 sm:$0xff]   ;;  %v2731_v43 = vld [vmem:[%s3212_s13 + $0x64] ss:$16 sps:$4 sm:$0xff]   ;;  %v2724_v53 = vld [vmem:[%s3212_s13 + $0x28] ss:$16 sps:$4 sm:$0xff]  }
  0x76   : > { %v2712_v47 = vld [vmem:[#allocation7 + $0x80] sm:$0xff]   ;;  %v2727_v55 = vld [vmem:[%s3212_s13 + $0x4c] ss:$16 sps:$4 sm:$0xff]   ;;  %v2730_v57 = vld [vmem:[%s3212_s13 + $0x48] ss:$16 sps:$4 sm:$0xff]  }
  0x77   : > { %2571 = vmatpush3.bf16.msra.mxu1 %v2678_v9  ;;  %2272 = vmatpush3.bf16.msra.mxu0 %v2678_v9  ;;  %v2735_v49 = vld [vmem:[%s3212_s13 + $0x60] ss:$16 sps:$4 sm:$0xff]   ;;  %v2737_v50 = vld [vmem:[%s3212_s13 + $0x84] ss:$16 sps:$4 sm:$0xff]   ;;  %v2733_v59 = vld [vmem:[%s3212_s13 + $0x6c] ss:$16 sps:$4 sm:$0xff]  }
  0x78   : > { %2564 = vmatprep.subr.bf16.mxu1 %v2679_v10  ;;  %2273 = vmatprep.subr.bf16.mxu0 %v2679_v10  ;;  %v2741_v52 = vld [vmem:[%s3212_s13 + $0x80] ss:$16 sps:$4 sm:$0xff]   ;;  %v2743_v54 = vld [vmem:[%s3212_s13 + $0xa4] ss:$16 sps:$4 sm:$0xff]   ;;  %v2736_v61 = vld [vmem:[%s3212_s13 + $0x68] ss:$16 sps:$4 sm:$0xff]  }
  0x79   : > { %v2747_v56 = vld [vmem:[%s3212_s13 + $0xa0] ss:$16 sps:$4 sm:$0xff]   ;;  %v2749_v58 = vld [vmem:[%s3212_s13 + $0xc4] ss:$16 sps:$4 sm:$0xff]   ;;  %v2739_v63 = vld [vmem:[%s3212_s13 + $0x8c] ss:$16 sps:$4 sm:$0xff]  }
  0x7a   : > { %v2753_v60 = vld [vmem:[%s3212_s13 + $0xc0] ss:$16 sps:$4 sm:$0xff]   ;;  %v2755_v62 = vld [vmem:[%s3212_s13 + $0xe4] ss:$16 sps:$4 sm:$0xff]   ;;  %v2742_v1 = vld [vmem:[%s3212_s13 + $0x88] ss:$16 sps:$4 sm:$0xff]  }
  0x7b   : > { %2572 = vmatpush3.bf16.msra.mxu1 %v2680_v12  ;;  %2274 = vmatpush3.bf16.msra.mxu0 %v2680_v12  ;;  %v2759_v0 = vld [vmem:[%s3212_s13 + $0xe0] ss:$16 sps:$4 sm:$0xff]   ;;  %v2761_v2 = vld [vmem:[%s3212_s13 + $0x104] ss:$16 sps:$4 sm:$0xff]   ;;  %v2745_v3 = vld [vmem:[%s3212_s13 + $0xac] ss:$16 sps:$4 sm:$0xff]  }
  0x7c   : > { %2565 = vmatprep.subr.bf16.mxu1 %v2681_v13  ;;  %2275 = vmatprep.subr.bf16.mxu0 %v2681_v13  ;;  %v2765_v4 = vld [vmem:[%s3212_s13 + $0x100] ss:$16 sps:$4 sm:$0xff]   ;;  %v2748_v5 = vld [vmem:[%s3212_s13 + $0xa8] ss:$16 sps:$4 sm:$0xff]   ;;  %v2767_v6 = vld [vmem:[%s3212_s13 + $0x124] ss:$16 sps:$4 sm:$0xff]  }
  0x7d   : > { %v2751_v7 = vld [vmem:[%s3212_s13 + $0xcc] ss:$16 sps:$4 sm:$0xff]   ;;  %v2771_v8 = vld [vmem:[%s3212_s13 + $0x120] ss:$16 sps:$4 sm:$0xff]   ;;  %v2754_v9 = vld [vmem:[%s3212_s13 + $0xc8] ss:$16 sps:$4 sm:$0xff]  }
  0x7e   : > { %v2773_v10 = vld [vmem:[%s3212_s13 + $0x144] ss:$16 sps:$4 sm:$0xff]   ;;  %v2757_v11 = vld [vmem:[%s3212_s13 + $0xec] ss:$16 sps:$4 sm:$0xff]   ;;  %v2777_v13 = vld [vmem:[%s3212_s13 + $0x140] ss:$16 sps:$4 sm:$0xff]  }
  0x7f   : > { %2573 = vmatpush3.bf16.msra.mxu1 %v2682_v14  ;;  %2276 = vmatpush3.bf16.msra.mxu0 %v2682_v14  ;;  %v2797_v12 = vld [vmem:[#allocation10 + $0x38] sm:$0xff]  }
  0x80   : > { %2566 = vmatprep.subr.bf16.mxu1 %v2683_v15  ;;  %2277 = vmatprep.subr.bf16.mxu0 %v2683_v15  ;;  %v2760_v14 = vld [vmem:[%s3212_s13 + $0xe8] ss:$16 sps:$4 sm:$0xff]   ;;  %v2779_v15 = vld [vmem:[%s3212_s13 + $0x164] ss:$16 sps:$4 sm:$0xff]  }
  0x81   : > { %v2778_v27 = vld [vmem:[%s3212_s13 + $0x148] ss:$16 sps:$4 sm:$0xff]  }
  0x83   : > { %2574 = vmatpush3.bf16.msra.mxu1 %v2684_v16  ;;  %2278 = vmatpush3.bf16.msra.mxu0 %v2684_v16  ;;  %v2763_v16 = vld [vmem:[%s3212_s13 + $0x10c] ss:$16 sps:$4 sm:$0xff]  }
  0x84   : > { %2375 = vmatprep.subr.bf16.mxu1 %v2688_v17  ;;  %2511 = vmatprep.subr.bf16.mxu0 %v2797_v12  ;;  %v2798_v17 = vld [vmem:[#allocation10 + $0x30] sm:$0xff]  }
  0x86   : > { %1137 = vmatmul.mubr.bf16.vlgmr.msra.gmra.mxu1 %v2685_v18  ;;  %1041 = vmatmul.mubr.bf16.vlgmr.msra.gmra.mxu0 %v2713_v26  ;;  %v2783_v18 = vld [vmem:[%s3212_s13 + $0x160] ss:$16 sps:$4 sm:$0xff]  }
  0x87   : > { %2376 = vmatpush3.bf16.msra.mxu1 %v2689_v19  ;;  %1144 = vmatprep.mubr.bf16.mxu1 %v2692_v20  ;;  %v2766_v19 = vld [vmem:[%s3212_s13 + $0x108] ss:$16 sps:$4 sm:$0xff]   ;;  %v2769_v20 = vld [vmem:[%s3212_s13 + $0x12c] ss:$16 sps:$4 sm:$0xff]   ;;  %v2802_v26 = vld [vmem:[#allocation10 + $0x10] sm:$0xff]  }
  0x88   : > { %2377 = vmatprep.subr.bf16.mxu1 %v2690_v21  ;;  %1048 = vmatprep.mubr.bf16.mxu0 %v2719_v30  ;;  %v2799_v21 = vld [vmem:[#allocation10 + $0x28] sm:$0xff]   ;;  %v2804_v30 = vld [vmem:[#allocation10] sm:$0xff]  }
  0x89   : > { %2512 = vmatpush3.bf16.msra.mxu0 %v2797_v12 }
  0x8a   : > { %2513 = vmatprep.subr.bf16.mxu0 %v2798_v17 }
  0x8b   : > { %2378 = vmatpush3.bf16.msra.mxu1 %v2691_v22  ;;  %v2800_v22 = vld [vmem:[#allocation10 + $0x20] sm:$0xff]  }
  0x8c   : > { %2379 = vmatprep.subr.bf16.mxu1 %v2695_v24  ;;  %v2775_v24 = vld [vmem:[%s3212_s13 + $0x14c] ss:$16 sps:$4 sm:$0xff]  }
  0x8d   : > { %2514 = vmatpush3.bf16.msra.mxu0 %v2798_v17 }
  0x8e   : > { %1145 = vmatmul.mubr.bf16.gmra.mxu1 %v2694_v23  ;;  %1049 = vmatmul.mubr.bf16.gmra.mxu0 %v2723_v34  ;;  %v2772_v23 = vld [vmem:[%s3212_s13 + $0x128] ss:$16 sps:$4 sm:$0xff]   ;;  %v2788_v34 = vld [vmem:[%s3212_s13 + $0x1ac] ss:$16 sps:$4 sm:$0xff]  }
  0x8f   : > { %2380 = vmatpush3.bf16.msra.mxu1 %v2696_v25  ;;  %1152 = vmatprep.mubr.bf16.mxu1 %v2699_v29  ;;  %v2801_v25 = vld [vmem:[#allocation10 + $0x18] sm:$0xff]   ;;  %v2803_v29 = vld [vmem:[#allocation10 + $0x8] sm:$0xff]  }
  0x90   : > { %2381 = vmatprep.subr.bf16.mxu1 %v2697_v28  ;;  %1056 = vmatprep.mubr.bf16.mxu0 %v2725_v35  ;;  %v2781_v28 = vld [vmem:[%s3212_s13 + $0x16c] ss:$16 sps:$4 sm:$0xff]   ;;  %v2790_v35 = vld [vmem:[%s3212_s13 + $0x1a8] ss:$16 sps:$4 sm:$0xff]  }
  0x91   : > { %2515 = vmatprep.subr.bf16.mxu0 %v2799_v21 }
  0x92   : > { %2516 = vmatpush3.bf16.msra.mxu0 %v2799_v21 }
  0x93   : > { %2382 = vmatpush3.bf16.msra.mxu1 %v2698_v31  ;;  %2517 = vmatprep.subr.bf16.mxu0 %v2800_v22  ;;  %v2784_v31 = vld [vmem:[%s3212_s13 + $0x168] ss:$16 sps:$4 sm:$0xff]  }
  0x94   : > { %2383 = vmatprep.subr.bf16.mxu1 %v2702_v33  ;;  %v2787_v33 = vld [vmem:[%s3212_s13 + $0x188] ss:$16 sps:$4 sm:$0xff]  }
  0x96   : > { %1153 = vmatmul.mubr.bf16.gmra.mxu1 %v2701_v32  ;;  %1057 = vmatmul.mubr.bf16.gmra.mxu0 %v2729_v42  ;;  %v2785_v32 = vld [vmem:[%s3212_s13 + $0x18c] ss:$16 sps:$4 sm:$0xff]  }
  0x97   : > { %2384 = vmatpush3.bf16.msra.mxu1 %v2703_v36  ;;  %1160 = vmatprep.mubr.bf16.mxu1 %v2706_v37  ;;  %v2791_v36 = vld [vmem:[%s3212_s13 + $0x1cc] ss:$16 sps:$4 sm:$0xff]   ;;  %v2793_v37 = vld [vmem:[%s3212_s13 + $0x1c8] ss:$16 sps:$4 sm:$0xff]  }
  0x98   : > { %2385 = vmatprep.subr.bf16.mxu1 %v2704_v38  ;;  %1064 = vmatprep.mubr.bf16.mxu0 %v2731_v43  ;;  %v2794_v38 = vld [vmem:[%s3212_s13 + $0x1ec] ss:$16 sps:$4 sm:$0xff]  }
  0x99   : > { %2518 = vmatpush3.bf16.msra.mxu0 %v2800_v22  ;;  %v3324_v22 = vstv %s1502_s30 }
  0x9a   : > { %2519 = vmatprep.subr.bf16.mxu0 %v2801_v25 }
  0x9b   : > { %2386 = vmatpush3.bf16.msra.mxu1 %v2705_v39  ;;  %v2796_v39 = vld [vmem:[%s3212_s13 + $0x1e8] ss:$16 sps:$4 sm:$0xff]  }
  0x9c   : > { %2387 = vmatprep.subr.bf16.mxu1 %v2709_v41 }
  0x9d   : > { %2520 = vmatpush3.bf16.msra.mxu0 %v2801_v25 }
  0x9e   : > { %1161 = vmatmul.mubr.bf16.gmra.mxu1 %v2708_v40  ;;  %1065 = vmatmul.mubr.bf16.gmra.mxu0 %v2735_v49 }
  0x9f   : > { %2388 = vmatpush3.bf16.msra.mxu1 %v2710_v44  ;;  %1201 = vmatprep.mubr.bf16.mxu1 %v2718_v45 }
  0xa0   : > { %2389 = vmatprep.subr.bf16.mxu1 %v2711_v46  ;;  %1072 = vmatprep.mubr.bf16.mxu0 %v2737_v50 }
  0xa1   : > { %2521 = vmatprep.subr.bf16.mxu0 %v2802_v26 }
  0xa2   : > { %2522 = vmatpush3.bf16.msra.mxu0 %v2802_v26 }
  0xa3   : > { %2390 = vmatpush3.bf16.msra.mxu1 %v2712_v47  ;;  %2523 = vmatprep.subr.bf16.mxu0 %v2803_v29 }
  0xa6   : > { %1202 = vmatmul.mubr.bf16.vlgmr.msra.gmra.mxu1 %v2716_v48  ;;  %1073 = vmatmul.mubr.bf16.gmra.mxu0 %v2741_v52 }
  0xa7   : > { %1209 = vmatprep.mubr.bf16.mxu1 %v2721_v51  ;;  %1080 = vmatprep.mubr.bf16.mxu0 %v2743_v54 }
  0xa8   : > { %2524 = vmatpush3.bf16.msra.mxu0 %v2803_v29 }
  0xa9   : > { %2525 = vmatprep.subr.bf16.mxu0 %v2804_v30 }
  0xac   : > { %2526 = vmatpush3.bf16.msra.mxu0 %v2804_v30 }
  0xae   : > { %1210 = vmatmul.mubr.bf16.gmra.mxu1 %v2724_v53  ;;  %1081 = vmatmul.mubr.bf16.gmra.mxu0 %v2747_v56 }
  0xaf   : > { %1217 = vmatprep.mubr.bf16.mxu1 %v2727_v55  ;;  %1088 = vmatprep.mubr.bf16.mxu0 %v2749_v58 }
  0xb6   : > { %1218 = vmatmul.mubr.bf16.gmra.mxu1 %v2730_v57  ;;  %1089 = vmatmul.mubr.bf16.gmra.mxu0 %v2753_v60 }
  0xb7   : > { %1225 = vmatprep.mubr.bf16.mxu1 %v2733_v59  ;;  %1096 = vmatprep.mubr.bf16.mxu0 %v2755_v62 }
  0xbe   : > { %1226 = vmatmul.mubr.bf16.gmra.mxu1 %v2736_v61  ;;  %1097 = vmatmul.mubr.bf16.gmra.mxu0 %v2759_v0 }
  0xbf   : > { %1233 = vmatprep.mubr.bf16.mxu1 %v2739_v63  ;;  %1104 = vmatprep.mubr.bf16.mxu0 %v2761_v2 }
  0xc6   : > { %1234 = vmatmul.mubr.bf16.gmra.mxu1 %v2742_v1  ;;  %1105 = vmatmul.mubr.bf16.gmra.mxu0 %v2765_v4 }
  0xc7   : > { %1241 = vmatprep.mubr.bf16.mxu1 %v2745_v3  ;;  %1112 = vmatprep.mubr.bf16.mxu0 %v2767_v6 }
  0xce   : > { %1242 = vmatmul.mubr.bf16.gmra.mxu1 %v2748_v5  ;;  %1113 = vmatmul.mubr.bf16.gmra.mxu0 %v2771_v8 }
  0xcf   : > { %1249 = vmatprep.mubr.bf16.mxu1 %v2751_v7  ;;  %1120 = vmatprep.mubr.bf16.mxu0 %v2773_v10 }
  0xd6   : > { %1250 = vmatmul.mubr.bf16.gmra.mxu1 %v2754_v9  ;;  %1121 = vmatmul.mubr.bf16.gmra.mxu0 %v2777_v13 }
  0xd7   : > { %1257 = vmatprep.mubr.bf16.mxu1 %v2757_v11  ;;  %1128 = vmatprep.mubr.bf16.mxu0 %v2779_v15 }
  0xde   : > { %1258 = vmatmul.mubr.bf16.gmra.mxu1 %v2760_v14  ;;  %1129 = vmatmul.mubr.bf16.gmra.mxu0 %v2783_v18  ;;  %v2185_v14 = vld [vmem:[%s3223_s8] sm:$0xff]  }
  0xdf   : > { %1265 = vmatprep.mubr.bf16.mxu1 %v2763_v16 }
  0xe6   : > { %1266 = vmatmul.mubr.bf16.gmra.mxu1 %v2766_v19  ;;  %v2186_v19 = vunpack.c.l.bf16 %v2185_v14 }
  0xe7   : > { %1273 = vmatprep.mubr.bf16.mxu1 %v2769_v20  ;;  %v2187_v20 = vunpack.c.h.bf16 %v2185_v14 }
  0xe9   : > { %v1569_v30 = vmul.f32 %v2187_v20, %v3324_v22 }
  0xee   : > { %1274 = vmatmul.mubr.bf16.gmra.mxu1 %v2772_v23 }
  0xef   : > { %1281 = vmatprep.mubr.bf16.mxu1 %v2775_v24 }
  0xf6   : > { %1282 = vmatmul.mubr.bf16.gmra.mxu1 %v2778_v27 }
  0xf7   : > { %1289 = vmatprep.mubr.bf16.mxu1 %v2781_v28  ;;  %v1568_v28 = vmul.f32 %v2186_v19, %v3324_v22 }
  0xfe   : > { %1290 = vmatmul.mubr.bf16.gmra.mxu1 %v2784_v31  ;;  %v2248_v31 = vld [vmem:[%s3223_s8 + $0x8] sm:$0xff]  }
  0xff   : > { %1297 = vmatprep.mubr.bf16.mxu1 %v2785_v32 }
 0x106   : > { %1298 = vmatmul.mubr.bf16.gmra.mxu1 %v2787_v33 }
 0x107   : > { %1305 = vmatprep.mubr.bf16.mxu1 %v2788_v34 }
 0x10e   : > { %1306 = vmatmul.mubr.bf16.gmra.mxu1 %v2790_v35 }
 0x10f   : > { %1313 = vmatprep.mubr.bf16.mxu1 %v2791_v36 }
 0x116   : > { %1314 = vmatmul.mubr.bf16.gmra.mxu1 %v2793_v37  ;;  %v2190_v37 = vunpack.c.l.bf16 %v2248_v31 }
 0x117   : > { %1321 = vmatprep.mubr.bf16.mxu1 %v2794_v38  ;;  %v2191_v38 = vunpack.c.h.bf16 %v2248_v31 }
 0x11e   : > { %1322 = vmatmul.mubr.bf16.gmra.mxu1 %v2796_v39 }
 0x146   : > { %v2351_v40 = vpop.f32.mrf.mxu1  ;;  %v2279_v46 = vpop.f32.mrf.mxu0 }
 0x148   : > { %v2352_v41 = vpop.f32.mrf.mxu1  ;;  %v2280_v48 = vpop.f32.mrf.mxu0 }
 0x149   : > { %v3297_v42 = vadd.f32 %v2352_v41, %v2351_v40  ;;  %v2281_v17 = vadd.f32 %v2280_v48, %v2279_v46 }
 0x14a   : > { %v2354_v43 = vpop.f32.mrf.mxu1  ;;  %v2282_v51 = vpop.f32.mrf.mxu0 }
 0x14c   : > { %v2355_v44 = vpop.f32.mrf.mxu1  ;;  %v2283_v53 = vpop.f32.mrf.mxu0 }
 0x14d   : > { %v3299_v45 = vadd.f32 %v2355_v44, %v2354_v43  ;;  %v2284_v24 = vadd.f32 %v2283_v53, %v2282_v51  ;;  %v1570_v53 = vmul.f32 %v2190_v37, %v3324_v22 }
 0x14e   : > { %v2357_v47 = vpop.f32.mrf.mxu1  ;;  %v2285_v56 = vpop.f32.mrf.mxu0 }
 0x150   : > { %v2358_v49 = vpop.f32.mrf.mxu1  ;;  %v2286_v58 = vpop.f32.mrf.mxu0 }
 0x151   : > { %v3301_v50 = vadd.f32 %v2358_v49, %v2357_v47  ;;  %v2287_v41 = vadd.f32 %v2286_v58, %v2285_v56 }
 0x152   : > { %v2360_v52 = vpop.f32.mrf.mxu1  ;;  %v2288_v61 = vpop.f32.mrf.mxu0 }
 0x154   : > { %v2361_v54 = vpop.f32.mrf.mxu1  ;;  %v2289_v63 = vpop.f32.mrf.mxu0 }
 0x155   : > { %v3303_v55 = vadd.f32 %v2361_v54, %v2360_v52  ;;  %v2290_v47 = vadd.f32 %v2289_v63, %v2288_v61 }
 0x156   : > { %v2363_v57 = vpop.f32.mrf.mxu1  ;;  %v3309_v2 = vpop.f32.mrf.mxu0 }
 0x158   : > { %v2364_v59 = vpop.f32.mrf.mxu1  ;;  %v2292_v4 = vpop.f32.mrf.mxu0 }
 0x159   : > { %v3305_v60 = vadd.f32 %v2364_v59, %v2363_v57  ;;  %v1571_v57 = vmul.f32 %v2191_v38, %v3324_v22  ;;  %v2249_v59 = vld [vmem:[%s3223_s8 + $0x10] sm:$0xff]  }
 0x15a   : > { %v2366_v62 = vpop.f32.mrf.mxu1  ;;  %v3313_v7 = vpop.f32.mrf.mxu0  ;;  %v2194_v61 = vunpack.c.l.bf16 %v2249_v59  ;;  %v2195_v63 = vunpack.c.h.bf16 %v2249_v59 }
 0x15c   : > { %v2367_v0 = vpop.f32.mrf.mxu1  ;;  %v2295_v9 = vpop.f32.mrf.mxu0 }
 0x15d   : > { %v3307_v1 = vadd.f32 %v2367_v0, %v2366_v62 }
 0x15e   : > { %v2369_v3 = vpop.f32.mrf.mxu1  ;;  %v3317_v12 = vpop.f32.mrf.mxu0 }
 0x160   : > { %v2370_v5 = vpop.f32.mrf.mxu1  ;;  %v3320_v15 = vpop.f32.mrf.mxu0 }
 0x161   : > { %v3311_v6 = vadd.f32 %v2370_v5, %v2369_v3 }
 0x162   : > { %v2372_v8 = vpop.f32.mrf.mxu1  ;;  %v3322_v21 = vpop.f32.mrf.mxu0 }
 0x164   : > { %v2373_v10 = vpop.f32.mrf.mxu1  ;;  %v3326_v25 = vpop.f32.mrf.mxu0 }
 0x165   : > { %v3315_v11 = vadd.f32 %v2373_v10, %v2372_v8  ;;  %v2293_v10 = vadd.f32 %v2292_v4, %v3309_v2 }
 0x166   : > { %v2391_v13 = vpop.f32.mrf.mxu1  ;;  %v3331_v32 = vpop.f32.mrf.mxu0 }
 0x168   : > { %v2392_v16 = vpop.f32.mrf.mxu1  ;;  %v3333_v35 = vpop.f32.mrf.mxu0 }
 0x169   : > { %v2393_v18 = vadd.f32 %v2392_v16, %v2391_v13 }
 0x16a   : > { %v2394_v23 = vpop.f32.mrf.mxu1  ;;  %v3335_v44 = vpop.f32.mrf.mxu0 }
 0x16b   : > { %v1204_v27 = vadd.f32 %v2393_v18, %v2281_v17  ;;  %v2296_v18 = vadd.f32 %v2295_v9, %v3313_v7 }
 0x16c   : > { %v2395_v26 = vpop.f32.mrf.mxu1  ;;  %v3337_v49 = vpop.f32.mrf.mxu0 }
 0x16d   : > { %v2396_v29 = vadd.f32 %v2395_v26, %v2394_v23  ;;  %v1600_v39 = vadd.f32 %v1568_v28, %v1204_v27  ;;  %v1573_v27 = vmul.f32 %v2195_v63, %v3324_v22  ;;  %v2250_v28 = vld [vmem:[%s3223_s8 + $0x18] sm:$0xff]  }
 0x16e   : > { %v2397_v33 = vpop.f32.mrf.mxu1  ;;  %v3342_v62 = vpop.f32.mrf.mxu0  ;;  %v2199_v7 = vunpack.c.h.bf16 %v2250_v28 }
 0x16f   : > { %v1207_v34 = vadd.f32 %v2396_v29, %v2284_v24  ;;  %v1572_v24 = vmul.f32 %v2194_v61, %v3324_v22 }
 0x170   : > { %v2398_v36 = vpop.f32.mrf.mxu1  ;;  %v3344_v0 = vpop.f32.mrf.mxu0 }
 0x171   : > { %v1601_v40 = vadd.f32 %v1569_v30, %v1207_v34  ;;  %v2399_v43 = vadd.f32 %v2398_v36, %v2397_v33  ;;  %v2198_v33 = vunpack.c.l.bf16 %v2250_v28  ;;  %v2299_v36 = vadd.f32 %v3320_v15, %v3317_v12 }
 0x172   : > { %v2400_v46 = vpop.f32.mrf.mxu1  ;;  %v3347_v14 = vpop.f32.mrf.mxu0 }
 0x173   : > { %v1632_v48 = vpack.c.bf16 %v1601_v40, %v1600_v39  ;;  %v1212_v52 = vadd.f32 %v2399_v43, %v2287_v41  ;;  %v2302_v40 = vadd.f32 %v3326_v25, %v3322_v21 }
 0x174   : > { %v2401_v51 = vpop.f32.mrf.mxu1  ;;  %v3350_v19 = vpop.f32.mrf.mxu0 }
 0x175   : > { %v2402_v54 = vadd.f32 %v2401_v51, %v2400_v46  ;;  %2527 = vmatprep.mubr.bf16.mxu0 %v1632_v48  ;;  %v1602_v5 = vadd.f32 %v1570_v53, %v1212_v52  ;;  %v1574_v48 = vmul.f32 %v2198_v33, %v3324_v22  ;;  %v1575_v52 = vmul.f32 %v2199_v7, %v3324_v22  ;;  %v2251_v53 = vld [vmem:[%s3223_s8 + $0x20] sm:$0xff]  }
 0x176   : > { %v2403_v56 = vpop.f32.mrf.mxu1  ;;  %v3355_v29 = vpop.f32.mrf.mxu0  ;;  %v2202_v21 = vunpack.c.l.bf16 %v2251_v53  ;;  %v2203_v25 = vunpack.c.h.bf16 %v2251_v53 }
 0x177   : > { %v1215_v58 = vadd.f32 %v2402_v54, %v2290_v47 }
 0x178   : > { %v2404_v3 = vpop.f32.mrf.mxu1  ;;  %v3357_v30 = vpop.f32.mrf.mxu0 }
 0x179   : > { %v1603_v8 = vadd.f32 %v1571_v57, %v1215_v58  ;;  %v2405_v13 = vadd.f32 %v2404_v3, %v2403_v56  ;;  %v2305_v3 = vadd.f32 %v3333_v35, %v3331_v32 }
 0x17a   : > { %v2406_v16 = vpop.f32.mrf.mxu1  ;;  %v3361_v38 = vpop.f32.mrf.mxu0 }
 0x17b   : > { %v1633_v17 = vpack.c.bf16 %v1603_v8, %v1602_v5  ;;  %v1220_v23 = vadd.f32 %v2405_v13, %v2293_v10  ;;  %v2308_v8 = vadd.f32 %v3337_v49, %v3335_v44 }
 0x17c   : > { %v2407_v20 = vpop.f32.mrf.mxu1  ;;  %v3365_v43 = vpop.f32.mrf.mxu0 }
 0x17d   : > { %v2408_v26 = vadd.f32 %v2407_v20, %v2406_v16  ;;  %2528 = vmatmul.mubr.bf16.vlgmr.msra.gmra.mxu0 %v1633_v17  ;;  %v1604_v9 = vadd.f32 %v1572_v24, %v1220_v23  ;;  %v1577_v23 = vmul.f32 %v2203_v25, %v3324_v22  ;;  %v2252_v24 = vld [vmem:[%s3223_s8 + $0x28] sm:$0xff]  }
 0x17e   : > { %v2409_v2 = vpop.f32.mrf.mxu1  ;;  %v3370_v12 = vpop.f32.mrf.mxu0  ;;  %v2206_v44 = vunpack.c.l.bf16 %v2252_v24  ;;  %v2207_v49 = vunpack.c.h.bf16 %v2252_v24 }
 0x17f   : > { %v1223_v4 = vadd.f32 %v2408_v26, %v2296_v18  ;;  %v1576_v18 = vmul.f32 %v2202_v21, %v3324_v22 }
 0x180   : > { %v2410_v31 = vpop.f32.mrf.mxu1  ;;  %v3372_v57 = vpop.f32.mrf.mxu0 }
 0x181   : > { %v1605_v34 = vadd.f32 %v1573_v27, %v1223_v4  ;;  %v2411_v37 = vadd.f32 %v2410_v31, %v2409_v2  ;;  %v2311_v31 = vadd.f32 %v3344_v0, %v3342_v62 }
 0x182   : > { %v2412_v39 = vpop.f32.mrf.mxu1  ;;  %v3376_v63 = vpop.f32.mrf.mxu0 }
 0x183   : > { %v1634_v41 = vpack.c.bf16 %v1605_v34, %v1604_v9  ;;  %v1228_v47 = vadd.f32 %v2411_v37, %v2299_v36  ;;  %v2314_v34 = vadd.f32 %v3350_v19, %v3347_v14 }
 0x184   : > { %v2413_v46 = vpop.f32.mrf.mxu1  ;;  %v3380_v13 = vpop.f32.mrf.mxu0 }
 0x185   : > { %v2414_v51 = vadd.f32 %v2413_v46, %v2412_v39  ;;  %2531 = vmatprep.mubr.bf16.mxu0 %v1634_v41  ;;  %v1606_v56 = vadd.f32 %v1574_v48, %v1228_v47  ;;  %v1578_v41 = vmul.f32 %v2206_v44, %v3324_v22  ;;  %v1579_v47 = vmul.f32 %v2207_v49, %v3324_v22  ;;  %v2253_v48 = vld [vmem:[%s3223_s8 + $0x30] sm:$0xff]  }
 0x186   : > { %v2415_v15 = vpop.f32.mrf.mxu1  ;;  %v3385_v32 = vpop.f32.mrf.mxu0  ;;  %v2210_v53 = vunpack.c.l.bf16 %v2253_v48  ;;  %v2326_v44 = vadd.f32 %v3380_v13, %v3376_v63 }
 0x187   : > { %v1231_v54 = vadd.f32 %v2414_v51, %v2302_v40 }
 0x188   : > { %v2416_v59 = vpop.f32.mrf.mxu1  ;;  %v3387_v27 = vpop.f32.mrf.mxu0 }
 0x189   : > { %v1607_v58 = vadd.f32 %v1575_v52, %v1231_v54  ;;  %v2417_v61 = vadd.f32 %v2416_v59, %v2415_v15  ;;  %v2211_v15 = vunpack.c.h.bf16 %v2253_v48  ;;  %v2317_v59 = vadd.f32 %v3357_v30, %v3355_v29 }
 0x18a   : > { %v2418_v5 = vpop.f32.mrf.mxu1  ;;  %v3391_v7 = vpop.f32.mrf.mxu0  ;;  %v2329_v13 = vadd.f32 %v3387_v27, %v3385_v32 }
 0x18b   : > { %v1635_v10 = vpack.c.bf16 %v1607_v58, %v1606_v56  ;;  %v1236_v17 = vadd.f32 %v2417_v61, %v2305_v3  ;;  %v2320_v56 = vadd.f32 %v3365_v43, %v3361_v38  ;;  %v2323_v43 = vadd.f32 %v3372_v57, %v3370_v12 }
 0x18c   : > { %v2419_v16 = vpop.f32.mrf.mxu1  ;;  %v2331_v37 = vpop.f32.mrf.mxu0 }
 0x18d   : > { %v2420_v20 = vadd.f32 %v2419_v16, %v2418_v5  ;;  %2532 = vmatmul.mubr.bf16.gmra.mxu0 %v1635_v10  ;;  %v1608_v2 = vadd.f32 %v1576_v18, %v1236_v17  ;;  %v1581_v16 = vmul.f32 %v2211_v15, %v3324_v22  ;;  %v2254_v17 = vld [vmem:[%s3223_s8 + $0x38] sm:$0xff]  }
 0x18e   : > { %v2421_v35 = vpop.f32.mrf.mxu1  ;;  %v3398_v51 = vpop.f32.mrf.mxu0  ;;  %v2214_v29 = vunpack.c.l.bf16 %v2254_v17  ;;  %v2215_v30 = vunpack.c.h.bf16 %v2254_v17 }
 0x18f   : > { %v1239_v26 = vadd.f32 %v2420_v20, %v2308_v8  ;;  %v1580_v8 = vmul.f32 %v2210_v53, %v3324_v22 }
 0x190   : > { %v2422_v28 = vpop.f32.mrf.mxu1  ;;  %v3400_v14 = vpop.f32.mrf.mxu0 }
 0x191   : > { %v1609_v4 = vadd.f32 %v1577_v23, %v1239_v26  ;;  %v2423_v33 = vadd.f32 %v2422_v28, %v2421_v35 }
 0x192   : > { %v2424_v9 = vpop.f32.mrf.mxu1  ;;  %v2336_v61 = vpop.f32.mrf.mxu0 }
 0x193   : > { %v1636_v36 = vpack.c.bf16 %v1609_v4, %v1608_v2  ;;  %v1244_v40 = vadd.f32 %v2423_v33, %v2311_v31  ;;  %v1582_v33 = vmul.f32 %v2214_v29, %v3324_v22 }
 0x194   : > { %v2425_v39 = vpop.f32.mrf.mxu1  ;;  %v2337_v24 = vpop.f32.mrf.mxu0 }
 0x195   : > { %v2426_v46 = vadd.f32 %v2425_v39, %v2424_v9  ;;  %2535 = vmatprep.mubr.bf16.mxu0 %v1636_v36  ;;  %v1610_v19 = vadd.f32 %v1578_v41, %v1244_v40  ;;  %v2255_v36 = vld [vmem:[%s3223_s8 + $0x40] sm:$0xff]   ;;  %v2338_v17 = vadd.f32 %v2337_v24, %v2336_v61 }
 0x196   : > { %v2427_v62 = vpop.f32.mrf.mxu1  ;;  %v2339_v4 = vpop.f32.mrf.mxu0  ;;  %v2218_v12 = vunpack.c.l.bf16 %v2255_v36  ;;  %v2219_v57 = vunpack.c.h.bf16 %v2255_v36 }
 0x197   : > { %v1247_v0 = vadd.f32 %v2426_v46, %v2314_v34  ;;  %v1583_v34 = vmul.f32 %v2215_v30, %v3324_v22 }
 0x198   : > { %v2428_v52 = vpop.f32.mrf.mxu1  ;;  %v2340_v46 = vpop.f32.mrf.mxu0 }
 0x199   : > { %v1611_v54 = vadd.f32 %v1579_v47, %v1247_v0  ;;  %v2429_v21 = vadd.f32 %v2428_v52, %v2427_v62  ;;  %v2332_v0 = vadd.f32 %v2331_v37, %v3391_v7  ;;  %v2335_v37 = vadd.f32 %v3400_v14, %v3398_v51 }
 0x19a   : > { %v2430_v25 = vpop.f32.mrf.mxu1  ;;  %v2342_v15 = vpop.f32.mrf.mxu0  ;;  %v2341_v24 = vadd.f32 %v2340_v46, %v2339_v4 }
 0x19b   : > { %v1637_v58 = vpack.c.bf16 %v1611_v54, %v1610_v19  ;;  %v1252_v5 = vadd.f32 %v2429_v21, %v2317_v59  ;;  %v1584_v54 = vmul.f32 %v2218_v12, %v3324_v22  ;;  %v1585_v21 = vmul.f32 %v2219_v57, %v3324_v22 }
 0x19c   : > { %v2431_v3 = vpop.f32.mrf.mxu1  ;;  %v2343_v27 = vpop.f32.mrf.mxu0 }
 0x19d   : > { %v2432_v10 = vadd.f32 %v2431_v3, %v2430_v25  ;;  %2536 = vmatmul.mubr.bf16.gmra.mxu0 %v1637_v58  ;;  %v1612_v35 = vadd.f32 %v1580_v8, %v1252_v5  ;;  %v2256_v25 = vld [vmem:[%s3223_s8 + $0x48] sm:$0xff]  }
 0x19e   : > { %v2433_v18 = vpop.f32.mrf.mxu1  ;;  %v2222_v5 = vunpack.c.l.bf16 %v2256_v25  ;;  %v2223_v32 = vunpack.c.h.bf16 %v2256_v25 }
 0x19f   : > { %v1255_v20 = vadd.f32 %v2432_v10, %v2320_v56 }
 0x1a0   : > { %v2434_v23 = vpop.f32.mrf.mxu1  ;;  %v1586_v30 = vmul.f32 %v2222_v5, %v3324_v22  ;;  %v2259_v5 = vld [vmem:[%s3223_s8 + $0x60] sm:$0xff]  }
 0x1a1   : > { %v1613_v38 = vadd.f32 %v1581_v16, %v1255_v20  ;;  %v2435_v26 = vadd.f32 %v2434_v23, %v2433_v18  ;;  %v2345_v23 = vpop.f32.mrf.mxu0 }
 0x1a2   : > { %v2436_v28 = vpop.f32.mrf.mxu1 }
 0x1a3   : > { %v1638_v49 = vpack.c.bf16 %v1613_v38, %v1612_v35  ;;  %v1260_v31 = vadd.f32 %v2435_v26, %v2323_v43  ;;  %v1587_v38 = vmul.f32 %v2223_v32, %v3324_v22  ;;  %v2257_v43 = vld [vmem:[%s3223_s8 + $0x50] sm:$0xff]   ;;  %v2346_v51 = vpop.f32.mrf.mxu0 }
 0x1a4   : > { %v2437_v2 = vpop.f32.mrf.mxu1 }
 0x1a5   : > { %v2438_v9 = vadd.f32 %v2437_v2, %v2436_v28  ;;  %2539 = vmatprep.mubr.bf16.mxu0 %v1638_v49  ;;  %v1614_v47 = vadd.f32 %v1582_v33, %v1260_v31  ;;  %v2226_v49 = vunpack.c.l.bf16 %v2257_v43  ;;  %v2227_v2 = vunpack.c.h.bf16 %v2257_v43  ;;  %v2260_v43 = vld [vmem:[%s3223_s8 + $0x68] sm:$0xff]  }
 0x1a6   : > { %v2439_v39 = vpop.f32.mrf.mxu1 }
 0x1a7   : > { %v1263_v40 = vadd.f32 %v2438_v9, %v2326_v44  ;;  %v2344_v9 = vadd.f32 %v2343_v27, %v2342_v15  ;;  %v1589_v57 = vmul.f32 %v2227_v2, %v3324_v22 }
 0x1a8   : > { %v2440_v41 = vpop.f32.mrf.mxu1 }
 0x1a9   : > { %v1615_v63 = vadd.f32 %v1583_v34, %v1263_v40  ;;  %v2441_v48 = vadd.f32 %v2440_v41, %v2439_v39  ;;  %v2348_v39 = vpop.f32.mrf.mxu0  ;;  %v1588_v41 = vmul.f32 %v2226_v49, %v3324_v22  ;;  %v2238_v49 = vunpack.c.l.bf16 %v2260_v43 }
 0x1aa   : > { %v2442_v62 = vpop.f32.mrf.mxu1 }
 0x1ab   : > { %v1639_v52 = vpack.c.bf16 %v1615_v63, %v1614_v47  ;;  %v1268_v19 = vadd.f32 %v2441_v48, %v2329_v13  ;;  %v2258_v47 = vld [vmem:[%s3223_s8 + $0x58] sm:$0xff]   ;;  %v2349_v4 = vpop.f32.mrf.mxu0 }
 0x1ac   : > { %v2443_v53 = vpop.f32.mrf.mxu1  ;;  %v2231_v46 = vunpack.c.h.bf16 %v2258_v47 }
 0x1ad   : > { %v2444_v59 = vadd.f32 %v2443_v53, %v2442_v62  ;;  %2540 = vmatmul.mubr.bf16.gmra.mxu0 %v1639_v52  ;;  %v1616_v8 = vadd.f32 %v1584_v54, %v1268_v19  ;;  %v2230_v62 = vunpack.c.l.bf16 %v2258_v47  ;;  %v2347_v53 = vadd.f32 %v2346_v51, %v2345_v23 }
 0x1ae   : > { %v2445_v56 = vpop.f32.mrf.mxu1  ;;  %v2350_v54 = vadd.f32 %v2349_v4, %v2348_v39  ;;  %v2261_v39 = vld [vmem:[%s3223_s8 + $0x70] sm:$0xff]  }
 0x1af   : > { %v1271_v58 = vadd.f32 %v2444_v59, %v2332_v0 }
 0x1b0   : > { %v2446_v3 = vpop.f32.mrf.mxu1 }
 0x1b1   : > { %v1617_v7 = vadd.f32 %v1585_v21, %v1271_v58  ;;  %v2447_v10 = vadd.f32 %v2446_v3, %v2445_v56  ;;  %v1590_v56 = vmul.f32 %v2230_v62, %v3324_v22  ;;  %v1591_v3 = vmul.f32 %v2231_v46, %v3324_v22 }
 0x1b2   : > { %v2448_v16 = vpop.f32.mrf.mxu1 }
 0x1b3   : > { %v1640_v18 = vpack.c.bf16 %v1617_v7, %v1616_v8  ;;  %v1276_v29 = vadd.f32 %v2447_v10, %v2335_v37  ;;  %v2234_v7 = vunpack.c.l.bf16 %v2259_v5 }
 0x1b4   : > { %v2449_v20 = vpop.f32.mrf.mxu1 }
 0x1b5   : > { %v2450_v35 = vadd.f32 %v2449_v20, %v2448_v16  ;;  %2543 = vmatprep.mubr.bf16.mxu0 %v1640_v18  ;;  %v1618_v14 = vadd.f32 %v1586_v30, %v1276_v29  ;;  %v1592_v30 = vmul.f32 %v2234_v7, %v3324_v22 }
 0x1b6   : > { %v2451_v26 = vpop.f32.mrf.mxu1 }
 0x1b7   : > { %v1279_v28 = vadd.f32 %v2450_v35, %v2338_v17  ;;  %v2235_v17 = vunpack.c.h.bf16 %v2259_v5 }
 0x1b8   : > { %v2452_v44 = vpop.f32.mrf.mxu1 }
 0x1b9   : > { %v1619_v61 = vadd.f32 %v1587_v38, %v1279_v28  ;;  %v2453_v31 = vadd.f32 %v2452_v44, %v2451_v26  ;;  %v1593_v38 = vmul.f32 %v2235_v17, %v3324_v22 }
 0x1ba   : > { %v2454_v33 = vpop.f32.mrf.mxu1 }
 0x1bb   : > { %v1641_v34 = vpack.c.bf16 %v1619_v61, %v1618_v14  ;;  %v1284_v40 = vadd.f32 %v2453_v31, %v2341_v24  ;;  %v2239_v61 = vunpack.c.h.bf16 %v2260_v43 }
 0x1bc   : > { %v2455_v36 = vpop.f32.mrf.mxu1 }
 0x1bd   : > { %v2456_v12 = vadd.f32 %v2455_v36, %v2454_v33  ;;  %2544 = vmatmul.mubr.bf16.gmra.mxu0 %v1641_v34  ;;  %v1620_v0 = vadd.f32 %v1588_v41, %v1284_v40  ;;  %v1595_v36 = vmul.f32 %v2239_v61, %v3324_v22 }
 0x1be   : > { %v2457_v63 = vpop.f32.mrf.mxu1 }
 0x1bf   : > { %v1287_v13 = vadd.f32 %v2456_v12, %v2344_v9  ;;  %v1594_v9 = vmul.f32 %v2238_v49, %v3324_v22  ;;  %v2242_v12 = vunpack.c.l.bf16 %v2261_v39 }
 0x1c0   : > { %v2458_v48 = vpop.f32.mrf.mxu1 }
 0x1c1   : > { %v1621_v52 = vadd.f32 %v1589_v57, %v1287_v13  ;;  %v2459_v15 = vadd.f32 %v2458_v48, %v2457_v63  ;;  %v2243_v13 = vunpack.c.h.bf16 %v2261_v39  ;;  %v1596_v46 = vmul.f32 %v2242_v12, %v3324_v22 }
 0x1c2   : > { %v2460_v19 = vpop.f32.mrf.mxu1 }
 0x1c3   : > { %v1642_v59 = vpack.c.bf16 %v1621_v52, %v1620_v0  ;;  %v1292_v25 = vadd.f32 %v2459_v15, %v2347_v53  ;;  %v1597_v52 = vmul.f32 %v2243_v13, %v3324_v22  ;;  %v2262_v53 = vld [vmem:[%s3223_s8 + $0x78] sm:$0xff]  }
 0x1c4   : > { %v2461_v21 = vpop.f32.mrf.mxu1 }
 0x1c5   : > { %v2462_v58 = vadd.f32 %v2461_v21, %v2460_v19  ;;  %2547 = vmatprep.mubr.bf16.mxu0 %v1642_v59  ;;  %v1622_v37 = vadd.f32 %v1590_v56, %v1292_v25  ;;  %v2247_v56 = vunpack.c.h.bf16 %v2262_v53 }
 0x1c6   : > { %v2463_v32 = vpop.f32.mrf.mxu1 }
 0x1c7   : > { %v1295_v27 = vadd.f32 %v2462_v58, %v2350_v54  ;;  %v2246_v54 = vunpack.c.l.bf16 %v2262_v53 }
 0x1c8   : > { %v2464_v8 = vpop.f32.mrf.mxu1 }
 0x1c9   : > { %v1623_v10 = vadd.f32 %v1591_v3, %v1295_v27  ;;  %v2465_v16 = vadd.f32 %v2464_v8, %v2463_v32  ;;  %v1598_v32 = vmul.f32 %v2246_v54, %v3324_v22  ;;  %v1599_v8 = vmul.f32 %v2247_v56, %v3324_v22 }
 0x1ca   : > { %v2466_v18 = vpop.f32.mrf.mxu1 }
 0x1cb   : > { %v1643_v20 = vpack.c.bf16 %v1623_v10, %v1622_v37  ;;  %v1300_v29 = vadd.f32 %v2465_v16, %v3297_v42  ;;  %v3456_v16 = vld [vmem:[%s3584_s5] ss:$0 sm:$0xff] }
 0x1cc   : > { %v2467_v23 = vpop.f32.mrf.mxu1 }
 0x1cd   : > { %v2468_v35 = vadd.f32 %v2467_v23, %v2466_v18  ;;  %2548 = vmatmul.mubr.bf16.gmra.mxu0 %v1643_v20  ;;  %v1624_v2 = vadd.f32 %v1592_v30, %v1300_v29 }
 0x1ce   : > { %v2469_v26 = vpop.f32.mrf.mxu1 }
 0x1cf   : > { %v1303_v28 = vadd.f32 %v2468_v35, %v3299_v45 }
 0x1d0   : > { %v2470_v44 = vpop.f32.mrf.mxu1 }
 0x1d1   : > { %v1625_v51 = vadd.f32 %v1593_v38, %v1303_v28  ;;  %v2471_v14 = vadd.f32 %v2470_v44, %v2469_v26 }
 0x1d2   : > { %v2472_v24 = vpop.f32.mrf.mxu1 }
 0x1d3   : > { %v1644_v31 = vpack.c.bf16 %v1625_v51, %v1624_v2  ;;  %v1308_v33 = vadd.f32 %v2471_v14, %v3301_v50 }
 0x1d4   : > { %v2473_v42 = vpop.f32.mrf.mxu1 }
 0x1d5   : > { %v2474_v34 = vadd.f32 %v2473_v42, %v2472_v24  ;;  %2551 = vmatprep.mubr.bf16.mxu0 %v1644_v31  ;;  %v1626_v57 = vadd.f32 %v1594_v9, %v1308_v33 }
 0x1d6   : > { %v2475_v40 = vpop.f32.mrf.mxu1 }
 0x1d7   : > { %v1311_v45 = vadd.f32 %v2474_v34, %v3303_v55 }
 0x1d8   : > { %v2476_v41 = vpop.f32.mrf.mxu1 }
 0x1d9   : > { %v1627_v47 = vadd.f32 %v1595_v36, %v1311_v45  ;;  %v2477_v63 = vadd.f32 %v2476_v41, %v2475_v40 }
 0x1da   : > { %v2478_v48 = vpop.f32.mrf.mxu1 }
 0x1db   : > { %v1645_v62 = vpack.c.bf16 %v1627_v47, %v1626_v57  ;;  %v1316_v4 = vadd.f32 %v2477_v63, %v3305_v60 }
 0x1dc   : > { %v2479_v50 = vpop.f32.mrf.mxu1 }
 0x1dd   : > { %v2480_v0 = vadd.f32 %v2479_v50, %v2478_v48  ;;  %2552 = vmatmul.mubr.bf16.gmra.mxu0 %v1645_v62  ;;  %v1628_v59 = vadd.f32 %v1596_v46, %v1316_v4 }
 0x1de   : > { %v2481_v15 = vpop.f32.mrf.mxu1 }
 0x1df   : > { %v1319_v55 = vadd.f32 %v2480_v0, %v3307_v1 }
 0x1e0   : > { %v2482_v19 = vpop.f32.mrf.mxu1 }
 0x1e1   : > { %v1629_v21 = vadd.f32 %v1597_v52, %v1319_v55  ;;  %v2483_v25 = vadd.f32 %v2482_v19, %v2481_v15 }
 0x1e2   : > { %v2484_v58 = vpop.f32.mrf.mxu1 }
 0x1e3   : > { %v1646_v3 = vpack.c.bf16 %v1629_v21, %v1628_v59  ;;  %v1324_v5 = vadd.f32 %v2483_v25, %v3311_v6 }
 0x1e4   : > { %v2485_v60 = vpop.f32.mrf.mxu1 }
 0x1e5   : > { %v2486_v27 = vadd.f32 %v2485_v60, %v2484_v58  ;;  %2555 = vmatprep.mubr.bf16.mxu0 %v1646_v3  ;;  %v1630_v7 = vadd.f32 %v1598_v32, %v1324_v5 }
 0x1e7   : > { %v1327_v1 = vadd.f32 %v2486_v27, %v3315_v11 }
 0x1e9   : > { %v1631_v37 = vadd.f32 %v1599_v8, %v1327_v1 }
 0x1eb   : > { %v1647_v10 = vpack.c.bf16 %v1631_v37, %v1630_v7 }
 0x1ed   : > { %2556 = vmatmul.mubr.bf16.gmra.mxu0 %v1647_v10 }
 0x23d   : > { %v2529_v17 = vpop.f32.mrf.mxu0 }
 0x23e   : > { %v1762_v6 = vadd.f32 %v2529_v17, %v3456_v16 }
 0x23f   : > { %v1753_v18 = vpop.f32.mrf.mxu0 }
 0x240   : > { %1882 = vst [vmem:[%s3459_s14 + $0x10] sm:$0xff] %v1762_v6  ;;  %v1754_v11 = vadd.f32 %v3456_v16, %v1753_v18 }
 0x241   : > { %v2530_v22 = vpop.f32.mrf.mxu0 }
 0x242   : > { %1880 = vst [vmem:[%s3459_s14] sm:$0xff] %v1754_v11  ;;  %v1765_v20 = vadd.f32 %v2530_v22, %v3456_v16 }
 0x243   : > { %v1756_v23 = vpop.f32.mrf.mxu0 }
 0x244   : > { %1883 = vst [vmem:[%s3459_s14 + $0x18] sm:$0xff] %v1765_v20  ;;  %v1757_v29 = vadd.f32 %v3456_v16, %v1756_v23 }
 0x246   : > { %1881 = vst [vmem:[%s3459_s14 + $0x8] sm:$0xff] %v1757_v29 }
 0x24d   : > { %v2533_v30 = vpop.f32.mrf.mxu0 }
 0x24e   : > { %v1778_v35 = vadd.f32 %v2533_v30, %v3456_v16 }
 0x24f   : > { %v1769_v38 = vpop.f32.mrf.mxu0 }
 0x250   : > { %1886 = vst [vmem:[%s3459_s14 + $0x30] sm:$0xff] %v1778_v35  ;;  %v1770_v43 = vadd.f32 %v3456_v16, %v1769_v38 }
 0x251   : > { %v2534_v26 = vpop.f32.mrf.mxu0 }
 0x252   : > { %1884 = vst [vmem:[%s3459_s14 + $0x20] sm:$0xff] %v1770_v43  ;;  %v1781_v28 = vadd.f32 %v2534_v26, %v3456_v16 }
 0x253   : > { %v1772_v44 = vpop.f32.mrf.mxu0 }
 0x254   : > { %1887 = vst [vmem:[%s3459_s14 + $0x38] sm:$0xff] %v1781_v28  ;;  %v1773_v49 = vadd.f32 %v3456_v16, %v1772_v44 }
 0x256   : > { %1885 = vst [vmem:[%s3459_s14 + $0x28] sm:$0xff] %v1773_v49 }
 0x25d   : > { %v2537_v2 = vpop.f32.mrf.mxu0 }
 0x25e   : > { %v1794_v51 = vadd.f32 %v2537_v2, %v3456_v16 }
 0x25f   : > { %v1785_v14 = vpop.f32.mrf.mxu0 }
 0x260   : > { %1890 = vst [vmem:[%s3459_s14 + $0x50] sm:$0xff] %v1794_v51  ;;  %v1786_v61 = vadd.f32 %v3456_v16, %v1785_v14 }
 0x261   : > { %v2538_v24 = vpop.f32.mrf.mxu0 }
 0x262   : > { %1888 = vst [vmem:[%s3459_s14 + $0x40] sm:$0xff] %v1786_v61  ;;  %v1797_v31 = vadd.f32 %v2538_v24, %v3456_v16 }
 0x263   : > { %v1788_v42 = vpop.f32.mrf.mxu0 }
 0x264   : > { %1891 = vst [vmem:[%s3459_s14 + $0x58] sm:$0xff] %v1797_v31  ;;  %v1789_v33 = vadd.f32 %v3456_v16, %v1788_v42 }
 0x266   : > { %1889 = vst [vmem:[%s3459_s14 + $0x48] sm:$0xff] %v1789_v33 }
 0x26d   : > { %v2541_v9 = vpop.f32.mrf.mxu0 }
 0x26e   : > { %v1810_v34 = vadd.f32 %v2541_v9, %v3456_v16 }
 0x26f   : > { %v1801_v36 = vpop.f32.mrf.mxu0 }
 0x270   : > { %1894 = vst [vmem:[%s3459_s14 + $0x70] sm:$0xff] %v1810_v34  ;;  %v1802_v39 = vadd.f32 %v3456_v16, %v1801_v36 }
 0x271   : > { %v2542_v40 = vpop.f32.mrf.mxu0 }
 0x272   : > { %1892 = vst [vmem:[%s3459_s14 + $0x60] sm:$0xff] %v1802_v39  ;;  %v1813_v45 = vadd.f32 %v2542_v40, %v3456_v16 }
 0x273   : > { %v1804_v41 = vpop.f32.mrf.mxu0 }
 0x274   : > { %1895 = vst [vmem:[%s3459_s14 + $0x78] sm:$0xff] %v1813_v45  ;;  %v1805_v12 = vadd.f32 %v3456_v16, %v1804_v41 }
 0x276   : > { %1893 = vst [vmem:[%s3459_s14 + $0x68] sm:$0xff] %v1805_v12 }
 0x27d   : > { %v2545_v57 = vpop.f32.mrf.mxu0 }
 0x27e   : > { %v1826_v47 = vadd.f32 %v2545_v57, %v3456_v16 }
 0x27f   : > { %v1817_v63 = vpop.f32.mrf.mxu0 }
 0x280   : > { %1898 = vst [vmem:[%s3459_s14 + $0x90] sm:$0xff] %v1826_v47  ;;  %v1818_v13 = vadd.f32 %v3456_v16, %v1817_v63 }
 0x281   : > { %v2546_v48 = vpop.f32.mrf.mxu0 }
 0x282   : > { %1896 = vst [vmem:[%s3459_s14 + $0x80] sm:$0xff] %v1818_v13  ;;  %v1829_v62 = vadd.f32 %v2546_v48, %v3456_v16 }
 0x283   : > { %v1820_v50 = vpop.f32.mrf.mxu0 }
 0x284   : > { %1899 = vst [vmem:[%s3459_s14 + $0x98] sm:$0xff] %v1829_v62  ;;  %v1821_v4 = vadd.f32 %v3456_v16, %v1820_v50 }
 0x286   : > { %1897 = vst [vmem:[%s3459_s14 + $0x88] sm:$0xff] %v1821_v4 }
 0x28d   : > { %v2549_v46 = vpop.f32.mrf.mxu0 }
 0x28e   : > { %v1842_v0 = vadd.f32 %v2549_v46, %v3456_v16 }
 0x28f   : > { %v1833_v52 = vpop.f32.mrf.mxu0 }
 0x290   : > { %1902 = vst [vmem:[%s3459_s14 + $0xb0] sm:$0xff] %v1842_v0  ;;  %v1834_v53 = vadd.f32 %v3456_v16, %v1833_v52 }
 0x291   : > { %v2550_v15 = vpop.f32.mrf.mxu0 }
 0x292   : > { %1900 = vst [vmem:[%s3459_s14 + $0xa0] sm:$0xff] %v1834_v53  ;;  %v1845_v55 = vadd.f32 %v2550_v15, %v3456_v16 }
 0x293   : > { %v1836_v19 = vpop.f32.mrf.mxu0 }
 0x294   : > { %1903 = vst [vmem:[%s3459_s14 + $0xb8] sm:$0xff] %v1845_v55  ;;  %v1837_v54 = vadd.f32 %v3456_v16, %v1836_v19 }
 0x296   : > { %1901 = vst [vmem:[%s3459_s14 + $0xa8] sm:$0xff] %v1837_v54 }
 0x29d   : > { %v2553_v59 = vpop.f32.mrf.mxu0 }
 0x29e   : > { %v1858_v21 = vadd.f32 %v2553_v59, %v3456_v16 }
 0x29f   : > { %v1849_v25 = vpop.f32.mrf.mxu0 }
 0x2a0   : > { %1906 = vst [vmem:[%s3459_s14 + $0xd0] sm:$0xff] %v1858_v21  ;;  %v1850_v56 = vadd.f32 %v3456_v16, %v1849_v25 }
 0x2a1   : > { %v2554_v58 = vpop.f32.mrf.mxu0 }
 0x2a2   : > { %1904 = vst [vmem:[%s3459_s14 + $0xc0] sm:$0xff] %v1850_v56  ;;  %v1861_v3 = vadd.f32 %v2554_v58, %v3456_v16 }
 0x2a3   : > { %v1852_v60 = vpop.f32.mrf.mxu0 }
 0x2a4   : > { %1907 = vst [vmem:[%s3459_s14 + $0xd8] sm:$0xff] %v1861_v3  ;;  %v1853_v5 = vadd.f32 %v3456_v16, %v1852_v60 }
 0x2a6   : > { %1905 = vst [vmem:[%s3459_s14 + $0xc8] sm:$0xff] %v1853_v5 }
 0x2ad   : > { %v2557_v32 = vpop.f32.mrf.mxu0 }
 0x2ae   : > { %v1874_v27 = vadd.f32 %v2557_v32, %v3456_v16 }
 0x2af   : > { %v1865_v8 = vpop.f32.mrf.mxu0 }
 0x2b0   : > { %1910 = vst [vmem:[%s3459_s14 + $0xf0] sm:$0xff] %v1874_v27  ;;  %v1866_v1 = vadd.f32 %v3456_v16, %v1865_v8 }
 0x2b1   : > { %v2558_v7 = vpop.f32.mrf.mxu0 }
 0x2b2   : > { %1908 = vst [vmem:[%s3459_s14 + $0xe0] sm:$0xff] %v1866_v1  ;;  %v1877_v37 = vadd.f32 %v2558_v7, %v3456_v16 }
 0x2b3   : > { %v1868_v10 = vpop.f32.mrf.mxu0 }
 0x2b4   : > { %1911 = vst [vmem:[%s3459_s14 + $0xf8] sm:$0xff] %v1877_v37  ;;  %v1869_v17 = vadd.f32 %v3456_v16, %v1868_v10 }
 0x2b6   : > { %1909 = vst [vmem:[%s3459_s14 + $0xe8] sm:$0xff] %v1869_v17 }
 0x2b7   : > { %2926 = shalt.err (!%p2923_p13)
}
 0x2b8   : > { %s2927_s13 = scalar_lea.hbm %s3526_s10, 4096  ;;  %s2931_s0 = scalar_lea.hbm %s3585_s6, 8192 }
 0x2b9   : > { %p2928_p11 = scmp.ne.s32.totalorder %s3526_s10, %s2927_s13  ;;  %p2932_p5 = scmp.lt.s32.totalorder %s3526_s10, %s3585_s6 }
 0x2ba   : > { %p2933_p10 = scmp.lt.s32.totalorder %s2931_s0, %s2927_s13 }
 0x2bb   : > { %p2929_p2 = pnand %p2928_p11, %p3145_p3 }
 0x2bc   : > { %p2934_p4 = por %p2933_p10, %p2932_p5 }
 0x2bd   : > { %p2930_p8 = pneg %p2929_p2 }
 0x2bf   : > { %p2935_p9 = pnand %p2934_p4, %p2930_p8 }
 0x2c1   : > { %2938 = shalt.err (!%p2935_p9)
}
 0x2c2   : > { %s3016_s21 = smov 128   ;;  %s3017_s2 = smov 8  }
 0x2c3   : > { %2587 = dma.vmem_to_hbm [thread:$0]  (%p3145_p3), %s3528_s16, 4096, %s3526_s10, %s1913_s26, %s3016_s21, %s3016_s21, %s3017_s2  }
 0x2c4 PF: > { %s1941_s22 = sand.u32 1, %s2985_s23   ;;  %p3618_p1 = scmp.ge.s32.totalorder %s3005_s28, 2 }
 0x2c5   : > { %s1942_s17 = scalar_lea.sflag [#allocation6], %s1941_s22 }
 0x2c6   : > { %p2604_p12 = pnand %p3618_p1, %p3101_p6 }
 0x2c8   : > { %p2605_p0 = pneg %p2604_p12 }
 0x2ca   : > { %2980 = dma.done.wait (%p2605_p0), %s1942_s17, 4096  }
 0x2cb   : > { %2982 = vsyncadd (%p2605_p0), %s1942_s17, 4294963200  ;;  %s24_s28 = sadd.s32 1, %s3005_s28   ;;  %s3619_s20 = sld [smem:[#allocation18_spill]] }
 0x2cc   : > { %p21_p7 = scmp.ge.s32.totalorder %s24_s28, 4   ;;  %s3620_s23 = smov %s2989_s24 }
 0x2cd   : > { %s3621_s24 = smov %s2993_s25  ;;  %s3622_s25 = smov %s3155_s9 }
 0x2ce   : > { %s3623_s26 = smov %s3001_s27  ;;  %23 = sbr.rel (!%p21_p7) target bundleno = 11 (0xb), region = 121 }
 0x2d1   : > { %s3624_s27 = smov %s3619_s20 }
 0x2d3   :  { %1947 = vsyncpa [#allocation5], 1 }
 0x2d4   :  { %1949 = vsyncpa [#allocation5 + $0x1], 1 }
 0x2d5   :  { %1950 = vsyncpa [#allocation8], 1 }
 0x2d6   :  { %1951 = vsyncpa [#allocation6], 1 }
 0x2d7   :  { %1953 = vsyncpa [#allocation6 + $0x1], 1 }

</bundles_post_ra>
